<compile_context>
chip_gen: v6e
topology: v6e:2x2x1
jax: 0.10.0
libtpu: 0.0.40
codegen_flags: <defaults>
</compile_context>

<pallas_src>
import functools

import jax
import jax.numpy as jnp
from jax import lax
from jax.experimental import pallas as pl
from jax.experimental.pallas import tpu as pltpu


def _gate_recurrent_kernel(gx_ref, g2_ref, o_ref, *,
                           reverse: bool, n_iters: int, rec_axis: int):
    """out = T^{n_iters}(gx), T(v) = gx + g2 * S(v), S = 1-px replicate shift
    along `rec_axis` (2 = lanes for horizontal, 1 = sublanes for vertical)."""
    gx = gx_ref[...]
    g2 = g2_ref[...]
    shape = gx.shape
    size = shape[rec_axis]

    # Full-block positional iota along the recurrence axis, built ONCE and
    # reused by every clamp mask (JAX does not CSE broadcast_in_dim).
    pos = lax.broadcasted_iota(jnp.int32, shape, dimension=rec_axis)

    def edge(v):
        if rec_axis == 2:
            return v[:, :, size - 1:size] if reverse else v[:, :, 0:1]
        return v[:, size - 1:size, :] if reverse else v[:, 0:1, :]

    def clamp_mask(a):
        # Positions whose shifted source falls outside the block -> edge value.
        if a <= 0 or a >= size:
            return None
        return (pos >= size - a) if reverse else (pos < a)

    def shift_clamped(v, a, mask):
        # S_a(v)[i] = v[max(i-a, 0)]       (forward)
        #           = v[min(i+a, size-1)]  (reverse)      -- `a` is static.
        if a <= 0:
            return v
        e = edge(v)
        if a >= size:
            return jnp.broadcast_to(e, v.shape)
        roll_amt = (size - a) if reverse else a
        rolled = pltpu.roll(v, shift=roll_amt, axis=rec_axis)
        return jnp.where(mask, e, rolled)

    # Square-and-multiply for T^m with m = n_iters + 1 (static -> unrolled at
    # trace time).  Base operator T^1: (c, P, shift) = (gx, g2, 1).
    m = n_iters + 1
    bc, bp, bs = gx, g2, 1          # base operator
    rc, rp = None, None             # accumulated result operator
    k = m
    while k > 0:
        mask = clamp_mask(bs)       # one mask per doubling step, shared by all
        if k & 1:                   # shift_clamped calls with this amount
            if rc is None:
                rc, rp = bc, bp
            else:
                new_c = bc + bp * shift_clamped(rc, bs, mask)
                # P of the result is only needed if more composes follow.
                new_p = bp * shift_clamped(rp, bs, mask) if (k >> 1) else None
                rc, rp = new_c, new_p
        k >>= 1
        if k:
            bc, bp, bs = (bc + bp * shift_clamped(bc, bs, mask),
                          bp * shift_clamped(bp, bs, mask),
                          min(bs + bs, size))   # shifts saturate at `size`

    o_ref[...] = rc


def _choose_blocks(n, other, rec, gran, max_elems, grid_target):
    """Pick (bn, bo): tile the fused B*C axis and the non-recurrence spatial
    axis.  The recurrence axis always stays full-extent inside the block.

    `gran` is the layout granularity of the tiled spatial axis (8 when it maps
    to sublanes, 128 when it maps to lanes): a block dim must be a multiple of
    `gran` or equal to the full extent."""
    rec = max(rec, 1)
    rows = max(1, max_elems // rec)              # bn*bo capacity (rows of rec)
    if other <= rows:
        bo = other                               # full dim -> layout-legal
        bn = max(1, min(n, rows // max(other, 1)))
    else:
        bo = max(gran, (rows // gran) * gran)
        bn = 1

    # Make sure the grid has enough program instances to feed the pipeline and
    # both TensorCores on megacore parts -- but never shrink blocks into
    # per-grid-step-overhead territory.
    min_block_elems = 64 * 1024

    def n_blocks(bn_, bo_):
        return ((n + bn_ - 1) // bn_) * ((other + bo_ - 1) // bo_)

    while n_blocks(bn, bo) < grid_target:
        if bn > 1 and (bn // 2) * bo * rec >= min_block_elems:
            bn //= 2
            continue
        new_bo = ((bo // 2) // gran) * gran
        if gran <= new_bo < bo and bn * new_bo * rec >= min_block_elems:
            bo = new_bo
            continue
        break
    return bn, bo


@functools.partial(jax.jit, static_argnames=("horizontal", "reverse"))
def gate_recurrent_2d_noind(X, G1, G2, G3, *, horizontal: bool, reverse: bool):
    """X, G1, G2, G3 are NCHW.  Returns NCHW float32 output."""
    B, C, H, W = X.shape

    def _resize(g):
        # matches F.interpolate(..., mode='bilinear', align_corners=False)
        return jax.image.resize(g.astype(jnp.float32),
                                (g.shape[0], g.shape[1], H, W),
                                method="bilinear")

    g1 = _resize(G1)
    g2 = _resize(G2)
    # G3 is resized but never read in the reference forward -> dead work.
    del G3

    x = X.astype(jnp.float32)
    gx = (g1 * x).reshape(B * C, H, W)           # usually fused into the resize
    g2 = g2.reshape(B * C, H, W)

    N = B * C
    n_iters = max(H, W) // 2

    # Generation-aware VMEM budgeting (64 MiB/TC on v7x vs 128 MiB earlier).
    try:
        vmem_cap = int(pltpu.get_tpu_info().vmem_capacity_bytes)
    except Exception:
        vmem_cap = 64 * 1024 * 1024              # conservative (v7x per-TC)
    vmem_budget = min(vmem_cap * 3 // 4, 96 * 1024 * 1024)
    # Budget: 6 pipelined buffers (2 in + 1 out, double-buffered) plus the
    # live temporaries of the unrolled doubling chain (~bc, bp, rc, rp + roll /
    # select intermediates) -> ~20 block-sized f32 arrays of headroom.
    block_bytes = vmem_budget // 20
    max_elems = max(block_bytes // 4, 8 * 128)

    if horizontal:
        rec_axis, rec = 2, W                     # recurrence on lanes
        other, gran = H, 8                       # tile H (sublane granularity)
    else:
        rec_axis, rec = 1, H                     # recurrence on sublanes
        other, gran = W, 128                     # tile W (lane granularity)

    bn, bo = _choose_blocks(N, other, rec, gran, max_elems, grid_target=8)
    grid = ((N + bn - 1) // bn, (other + bo - 1) // bo)

    if horizontal:
        block_shape = (bn, bo, rec)
        index_map = lambda i, j: (i, j, 0)
    else:
        block_shape = (bn, rec, bo)
        index_map = lambda i, j: (i, 0, j)

    kernel = functools.partial(_gate_recurrent_kernel,
                               reverse=reverse, n_iters=n_iters,
                               rec_axis=rec_axis)
    spec = pl.BlockSpec(block_shape, index_map)

    total = N * H * W
    n_steps = (n_iters + 1).bit_length()
    cost = pl.CostEstimate(flops=int(7 * n_steps * total),
                           transcendentals=0,
                           bytes_accessed=int(3 * 4 * total))

    out = pl.pallas_call(
        kernel,
        out_shape=jax.ShapeDtypeStruct((N, H, W), jnp.float32),
        grid=grid,
        in_specs=[spec, spec],
        out_specs=spec,
        compiler_params=pltpu.CompilerParams(
            dimension_semantics=("parallel", "parallel"),
            vmem_limit_bytes=vmem_budget,
        ),
        cost_estimate=cost,
    )(gx, g2)

    return out.reshape(B, C, H, W)


def _reference(X, G1, G2, *, horizontal: bool, reverse: bool):
    """Independent pure-JAX reference (pad + slice, serial loop)."""
    B, C, H, W = X.shape

    def _resize(g):
        return jax.image.resize(g.astype(jnp.float32),
                                (g.shape[0], g.shape[1], H, W),
                                method="bilinear")

    g1 = _resize(G1)
    g2 = _resize(G2)
    x = X.astype(jnp.float32)
    out = g1 * x
    for _ in range(max(H, W) // 2):
        p = jnp.pad(out, ((0, 0), (0, 0), (1, 1), (1, 1)), mode="edge")
        if horizontal:
            prop = p[:, :, 1:-1, 2:] if reverse else p[:, :, 1:-1, :-2]
        else:
            prop = p[:, :, 2:, 1:-1] if reverse else p[:, :, :-2, 1:-1]
        out = g1 * x + g2 * prop
    return out


if __name__ == "__main__":
    key = jax.random.PRNGKey(0)
    ok = True

    # Two shapes: square, and rectangular (exercises the sublane-roll vertical
    # path and the shift-saturation path where n_iters >= recurrence extent).
    cases = [
        ((2, 4, 16, 16), (8, 8)),
        ((1, 3, 16, 8), (8, 4)),
    ]

    for (B, C, H, W), (gh, gw) in cases:
        key, kx, k1, k2, k3 = jax.random.split(key, 5)
        X = jax.random.normal(kx, (B, C, H, W), dtype=jnp.float32)
        # gates at lower resolution so the bilinear interpolate actually matters
        G1 = jax.random.uniform(k1, (B, C, gh, gw), dtype=jnp.float32)
        G2 = jax.random.uniform(k2, (B, C, gh, gw), dtype=jnp.float32)
        G3 = jax.random.uniform(k3, (B, C, gh, gw), dtype=jnp.float32)

        for horizontal in (True, False):
            for reverse in (True, False):
                out = gate_recurrent_2d_noind(X, G1, G2, G3,
                                              horizontal=horizontal,
                                              reverse=reverse)
                out = jax.block_until_ready(out)
                ref = _reference(X, G1, G2, horizontal=horizontal,
                                 reverse=reverse)
                # Tolerance slightly loosened vs the serial reference: the
                # log-depth doubling reassociates the gated sum.
                if not jnp.allclose(out, ref, atol=1e-4, rtol=1e-4):
                    ok = False
                    print(f"MISMATCH shape={(B, C, H, W)} "
                          f"horizontal={horizontal} reverse={reverse} "
                          f"maxerr={float(jnp.max(jnp.abs(out - ref)))}")

    if ok:
        print("KERNEL_OK")
</pallas_src>

<mosaic_0001>
module attributes {stable_mosaic.version = 11 : i64} {
  func.func @_gate_recurrent_kernel(%arg0: i32, %arg1: i32, %arg2: memref<8x16x16xf32, #tpu.memory_space<vmem>>, %arg3: memref<8x16x16xf32, #tpu.memory_space<vmem>>, %arg4: memref<8x16x16xf32, #tpu.memory_space<vmem>>) attributes {dimension_semantics = [#tpu.dimension_semantics<parallel>, #tpu.dimension_semantics<parallel>], iteration_bounds = array<i64: 1, 1>, scalar_prefetch = 0 : i64, scratch_operands = 0 : i64, tpu.core_type = #tpu.core_type<tc>, window_params = [{transform_indices = @transform_0, window_bounds = array<i64: 8, 16, 16>}, {transform_indices = @transform_1, window_bounds = array<i64: 8, 16, 16>}, {transform_indices = @transform_2, window_bounds = array<i64: 8, 16, 16>}]} {
    %c0 = arith.constant 0 : index
    %c0_0 = arith.constant 0 : index
    %c0_1 = arith.constant 0 : index
    %0 = vector.load %arg2[%c0, %c0_0, %c0_1] : memref<8x16x16xf32, #tpu.memory_space<vmem>>, vector<8x16x16xf32>
    %c0_2 = arith.constant 0 : index
    %c0_3 = arith.constant 0 : index
    %c0_4 = arith.constant 0 : index
    %1 = vector.load %arg3[%c0_2, %c0_3, %c0_4] : memref<8x16x16xf32, #tpu.memory_space<vmem>>, vector<8x16x16xf32>
    %2 = tpu.iota {dimensions = array<i32: 2>} : vector<8x16x16xi32>
    %c15_i32 = arith.constant 15 : i32
    %3 = vector.broadcast %c15_i32 : i32 to vector<8x16x16xi32>
    %4 = arith.cmpi sge, %2, %3 : vector<8x16x16xi32>
    %5 = vector.extract_strided_slice %0 {offsets = [0, 0, 15], sizes = [8, 16, 1], strides = [1, 1, 1]} : vector<8x16x16xf32> to vector<8x16x1xf32>
    %c15_i32_5 = arith.constant 15 : i32
    %6 = tpu.dynamic_rotate %0 by %c15_i32_5 dim 2 : vector<8x16x16xf32>, i32 -> vector<8x16x16xf32>
    %7 = vector.shape_cast %5 : vector<8x16x1xf32> to vector<8x16x1xf32>
    %8 = vector.broadcast %7 : vector<8x16x1xf32> to vector<8x16x16xf32>
    %9 = arith.select %4, %8, %6 : vector<8x16x16xi1>, vector<8x16x16xf32>
    %10 = arith.mulf %1, %9 : vector<8x16x16xf32>
    %11 = arith.addf %0, %10 : vector<8x16x16xf32>
    %12 = vector.extract_strided_slice %1 {offsets = [0, 0, 15], sizes = [8, 16, 1], strides = [1, 1, 1]} : vector<8x16x16xf32> to vector<8x16x1xf32>
    %c15_i32_6 = arith.constant 15 : i32
    %13 = tpu.dynamic_rotate %1 by %c15_i32_6 dim 2 : vector<8x16x16xf32>, i32 -> vector<8x16x16xf32>
    %14 = vector.shape_cast %12 : vector<8x16x1xf32> to vector<8x16x1xf32>
    %15 = vector.broadcast %14 : vector<8x16x1xf32> to vector<8x16x16xf32>
    %16 = arith.select %4, %15, %13 : vector<8x16x16xi1>, vector<8x16x16xf32>
    %17 = arith.mulf %1, %16 : vector<8x16x16xf32>
    %c14_i32 = arith.constant 14 : i32
    %18 = vector.broadcast %c14_i32 : i32 to vector<8x16x16xi32>
    %19 = arith.cmpi sge, %2, %18 : vector<8x16x16xi32>
    %20 = vector.extract_strided_slice %11 {offsets = [0, 0, 15], sizes = [8, 16, 1], strides = [1, 1, 1]} : vector<8x16x16xf32> to vector<8x16x1xf32>
    %c14_i32_7 = arith.constant 14 : i32
    %21 = tpu.dynamic_rotate %11 by %c14_i32_7 dim 2 : vector<8x16x16xf32>, i32 -> vector<8x16x16xf32>
    %22 = vector.shape_cast %20 : vector<8x16x1xf32> to vector<8x16x1xf32>
    %23 = vector.broadcast %22 : vector<8x16x1xf32> to vector<8x16x16xf32>
    %24 = arith.select %19, %23, %21 : vector<8x16x16xi1>, vector<8x16x16xf32>
    %25 = arith.mulf %17, %24 : vector<8x16x16xf32>
    %26 = arith.addf %11, %25 : vector<8x16x16xf32>
    %27 = vector.extract_strided_slice %17 {offsets = [0, 0, 15], sizes = [8, 16, 1], strides = [1, 1, 1]} : vector<8x16x16xf32> to vector<8x16x1xf32>
    %c14_i32_8 = arith.constant 14 : i32
    %28 = tpu.dynamic_rotate %17 by %c14_i32_8 dim 2 : vector<8x16x16xf32>, i32 -> vector<8x16x16xf32>
    %29 = vector.shape_cast %27 : vector<8x16x1xf32> to vector<8x16x1xf32>
    %30 = vector.broadcast %29 : vector<8x16x1xf32> to vector<8x16x16xf32>
    %31 = arith.select %19, %30, %28 : vector<8x16x16xi1>, vector<8x16x16xf32>
    %32 = arith.mulf %17, %31 : vector<8x16x16xf32>
    %c12_i32 = arith.constant 12 : i32
    %33 = vector.broadcast %c12_i32 : i32 to vector<8x16x16xi32>
    %34 = arith.cmpi sge, %2, %33 : vector<8x16x16xi32>
    %35 = vector.extract_strided_slice %26 {offsets = [0, 0, 15], sizes = [8, 16, 1], strides = [1, 1, 1]} : vector<8x16x16xf32> to vector<8x16x1xf32>
    %c12_i32_9 = arith.constant 12 : i32
    %36 = tpu.dynamic_rotate %26 by %c12_i32_9 dim 2 : vector<8x16x16xf32>, i32 -> vector<8x16x16xf32>
    %37 = vector.shape_cast %35 : vector<8x16x1xf32> to vector<8x16x1xf32>
    %38 = vector.broadcast %37 : vector<8x16x1xf32> to vector<8x16x16xf32>
    %39 = arith.select %34, %38, %36 : vector<8x16x16xi1>, vector<8x16x16xf32>
    %40 = arith.mulf %32, %39 : vector<8x16x16xf32>
    %41 = arith.addf %26, %40 : vector<8x16x16xf32>
    %42 = vector.extract_strided_slice %32 {offsets = [0, 0, 15], sizes = [8, 16, 1], strides = [1, 1, 1]} : vector<8x16x16xf32> to vector<8x16x1xf32>
    %c12_i32_10 = arith.constant 12 : i32
    %43 = tpu.dynamic_rotate %32 by %c12_i32_10 dim 2 : vector<8x16x16xf32>, i32 -> vector<8x16x16xf32>
    %44 = vector.shape_cast %42 : vector<8x16x1xf32> to vector<8x16x1xf32>
    %45 = vector.broadcast %44 : vector<8x16x1xf32> to vector<8x16x16xf32>
    %46 = arith.select %34, %45, %43 : vector<8x16x16xi1>, vector<8x16x16xf32>
    %47 = arith.mulf %32, %46 : vector<8x16x16xf32>
    %c8_i32 = arith.constant 8 : i32
    %48 = vector.broadcast %c8_i32 : i32 to vector<8x16x16xi32>
    %49 = arith.cmpi sge, %2, %48 : vector<8x16x16xi32>
    %50 = vector.extract_strided_slice %0 {offsets = [0, 0, 15], sizes = [8, 16, 1], strides = [1, 1, 1]} : vector<8x16x16xf32> to vector<8x16x1xf32>
    %c8_i32_11 = arith.constant 8 : i32
    %51 = tpu.dynamic_rotate %0 by %c8_i32_11 dim 2 : vector<8x16x16xf32>, i32 -> vector<8x16x16xf32>
    %52 = vector.shape_cast %50 : vector<8x16x1xf32> to vector<8x16x1xf32>
    %53 = vector.broadcast %52 : vector<8x16x1xf32> to vector<8x16x16xf32>
    %54 = arith.select %49, %53, %51 : vector<8x16x16xi1>, vector<8x16x16xf32>
    %55 = arith.mulf %47, %54 : vector<8x16x16xf32>
    %56 = arith.addf %41, %55 : vector<8x16x16xf32>
    %c0_12 = arith.constant 0 : index
    %c0_13 = arith.constant 0 : index
    %c0_14 = arith.constant 0 : index
    %57 = vector.load %arg4[%c0_12, %c0_13, %c0_14] : memref<8x16x16xf32, #tpu.memory_space<vmem>>, vector<8x16x16xf32>
    tpu.vector_store %arg4[%c0_12, %c0_13, %c0_14], %56 {strides = array<i32>} : memref<8x16x16xf32, #tpu.memory_space<vmem>>, vector<8x16x16xf32>,
    return
  }
  func.func @transform_0(%arg0: i32, %arg1: i32) -> (i32, i32, i32) {
    %c0_i32 = arith.constant 0 : i32
    %c0_i32_0 = arith.constant 0 : i32
    return %arg0, %arg1, %c0_i32 : i32, i32, i32
  }
  func.func @transform_1(%arg0: i32, %arg1: i32) -> (i32, i32, i32) {
    %c0_i32 = arith.constant 0 : i32
    %c0_i32_0 = arith.constant 0 : i32
    return %arg0, %arg1, %c0_i32 : i32, i32, i32
  }
  func.func @transform_2(%arg0: i32, %arg1: i32) -> (i32, i32, i32) {
    %c0_i32 = arith.constant 0 : i32
    %c0_i32_0 = arith.constant 0 : i32
    return %arg0, %arg1, %c0_i32 : i32, i32, i32
  }
}

</mosaic_0001>

<bundles_post_ra>
// kernel: gate_recurrent_2d_noind.1
= control target key start
LH: loop header
LB: loop body
LE: loop exit
PB: predicated region body
PF: predicated region fallthrough
CT: control target
= control target key end

     0   :  { %s1893_s13 = smov 16   ;;  %v1894_v4 = vmov 15   ;;  %s3939_s0 = inlined_call_operand.vmem [shape: f32[8,16,16], index: 0, kind: input, shape index: {}]   ;;  %s3940_s1 = inlined_call_operand.vmem [shape: f32[8,16,16], index: 1, kind: input, shape index: {}]   ;;  %s3941_s2 = inlined_call_operand.hbm [shape: f32[8,16,16], index: 2, kind: output, shape index: {}]  }
   0x1   :  { %v1920_v0 = vld [vmem:[%s3939_s0 + $0x10] sm:$0xff]  ;;  %v1925_v1 = vld [vmem:[%s3939_s0] sm:$0xff]  ;;  %v1934_v2 = vld [vmem:[%s3939_s0 + $0x18] sm:$0xff]  ;;  %1870 = vset.pattern.permute.xlu1 %v1894_v4  ;;  %1869 = vset.pattern.permute.xlu0 %v1894_v4 }
   0x2   :  { %54 = vrot.lane.b32.xlu1 %v1920_v0, %s1893_s13  ;;  %48 = vrot.lane.b32.xlu0 %v1925_v1, %s1893_s13  ;;  %v1939_v3 = vld [vmem:[%s3939_s0 + $0x8] sm:$0xff]  ;;  %v1953_v6 = vld [vmem:[%s3939_s0 + $0x20] sm:$0xff] }
   0x3   :  { %v1948_v5 = vld [vmem:[%s3939_s0 + $0x28] sm:$0xff]  ;;  %v1962_v7 = vld [vmem:[%s3939_s0 + $0x38] sm:$0xff]  ;;  %v1967_v8 = vld [vmem:[%s3939_s0 + $0x30] sm:$0xff] }
   0x4   :  { %4003 = vst [vmem:[#allocation5_spill] sm:$0xff] %v1962_v7  ;;  %4004 = vst [vmem:[#allocation6_spill] sm:$0xff] %v1967_v8 }
   0x6   :  { %57 = vrot.lane.b32.xlu1 %v1934_v2, %s1893_s13  ;;  %51 = vrot.lane.b32.xlu0 %v1939_v3, %s1893_s13 }
   0xa   :  { %63 = vrot.lane.b32.xlu1 %v1948_v5, %s1893_s13  ;;  %60 = vrot.lane.b32.xlu0 %v1953_v6, %s1893_s13 }
   0xb   :  { %7 = vsyncpa [#allocation3], 0  ;;  %v1976_v9 = vld [vmem:[%s3939_s0 + $0x48] sm:$0xff]  ;;  %v1981_v10 = vld [vmem:[%s3939_s0 + $0x40] sm:$0xff]  ;;  %vm47_vm0 = vcmask 1047680   ;;  %s1896_s18 = smov 120  }
   0xc   :  { %4005 = vst [vmem:[#allocation7_spill] sm:$0xff] %v1976_v9  ;;  %4006 = vst [vmem:[#allocation8_spill] sm:$0xff] %v1981_v10  ;;  %v1990_v11 = vld [vmem:[%s3939_s0 + $0x58] sm:$0xff]  ;;  %v1995_v12 = vld [vmem:[%s3939_s0 + $0x50] sm:$0xff]  ;;  %s1897_s19 = smov 126   ;;  %vm1827_vm5 = vcmask 130048  }
   0xd   :  { %4007 = vst [vmem:[#allocation9_spill] sm:$0xff] %v1990_v11  ;;  %4008 = vst [vmem:[#allocation10_spill] sm:$0xff] %v1995_v12  ;;  %v2004_v13 = vld [vmem:[%s3939_s0 + $0x68] sm:$0xff]  ;;  %v2009_v14 = vld [vmem:[%s3939_s0 + $0x60] sm:$0xff]  ;;  %s1899_s20 = smov [#allocation2]  }
   0xe   :  { %69 = vrot.lane.b32.xlu1 %v1962_v7, %s1893_s13  ;;  %66 = vrot.lane.b32.xlu0 %v1967_v8, %s1893_s13  ;;  %4009 = vst [vmem:[#allocation11_spill] sm:$0xff] %v2004_v13  ;;  %4010 = vst [vmem:[#allocation12_spill] sm:$0xff] %v2009_v14  ;;  %v2018_v15 = vld [vmem:[%s3939_s0 + $0x78] sm:$0xff]  ;;  %v2023_v16 = vld [vmem:[%s3939_s0 + $0x70] sm:$0xff]  ;;  %s1849_s21 = sshll.u32 %s1899_s20, 4  ;;  %s1850_s21 = int_to_ptr.vmem [resolvable:$true] %s1849_s21 }
   0xf   :  { %4011 = vst [vmem:[#allocation13_spill] sm:$0xff] %v2018_v15  ;;  %4012 = vst [vmem:[#allocation14_spill] sm:$0xff] %v2023_v16  ;;  %v2048_v17 = vld [vmem:[%s3940_s1] sm:$0xff]  ;;  %v2053_v18 = vld [vmem:[%s3940_s1 + $0x8] sm:$0xff]  ;;  %s1871_s22 = scalar_lea.vmem %s1850_s21, 2048  ;;  %p1876_p1 = scmp.lt.s32.totalorder %s1850_s21, %s1850_s21 }
  0x10   :  { %v2062_v19 = vld [vmem:[%s3940_s1 + $0x10] sm:$0xff]  ;;  %v2067_v20 = vld [vmem:[%s3940_s1 + $0x18] sm:$0xff]  ;;  %v2076_v21 = vld [vmem:[%s3940_s1 + $0x20] sm:$0xff]  ;;  %p1872_p0 = scmp.ne.s32.totalorder %s1850_s21, %s1871_s22  ;;  %p1877_p2 = scmp.lt.s32.totalorder %s1871_s22, %s1871_s22 }
  0x11   :  { %v2081_v22 = vld [vmem:[%s3940_s1 + $0x28] sm:$0xff]  ;;  %v2090_v23 = vld [vmem:[%s3940_s1 + $0x30] sm:$0xff]  ;;  %v2095_v24 = vld [vmem:[%s3940_s1 + $0x38] sm:$0xff] }
  0x12   :  { %75 = vrot.lane.b32.xlu1 %v1976_v9, %s1893_s13  ;;  %72 = vrot.lane.b32.xlu0 %v1981_v10, %s1893_s13  ;;  %v2104_v25 = vld [vmem:[%s3940_s1 + $0x40] sm:$0xff]  ;;  %v2109_v26 = vld [vmem:[%s3940_s1 + $0x48] sm:$0xff]  ;;  %p1878_p3 = por %p1877_p2, %p1876_p1 }
  0x13   :  { %v2118_v27 = vld [vmem:[%s3940_s1 + $0x50] sm:$0xff]  ;;  %v2172_v60 = vld [vmem:[%s3940_s1 + $0x58] sm:$0xff]  ;;  %v2180_v61 = vld [vmem:[%s3940_s1 + $0x60] sm:$0xff] }
  0x14   :  { %v2185_v62 = vld [vmem:[%s3940_s1 + $0x68] sm:$0xff]  ;;  %v2194_v63 = vld [vmem:[%s3940_s1 + $0x70] sm:$0xff]  ;;  %v2199_v4 = vld [vmem:[%s3940_s1 + $0x78] sm:$0xff]  ;;  %s1895_s1 = smov 127   ;;  %p1879_p4 = pnand %p1878_p3, %p1872_p0 }
  0x16   :  { %81 = vrot.lane.b32.xlu1 %v1990_v11, %s1893_s13  ;;  %78 = vrot.lane.b32.xlu0 %v1995_v12, %s1893_s13 }
  0x1a   :  { %87 = vrot.lane.b32.xlu1 %v2004_v13, %s1893_s13  ;;  %84 = vrot.lane.b32.xlu0 %v2009_v14, %s1893_s13 }
  0x1e   :  { %93 = vrot.lane.b32.xlu1 %v2018_v15, %s1893_s13  ;;  %90 = vrot.lane.b32.xlu0 %v2023_v16, %s1893_s13 }
  0x22   :  { %151 = vperm.xlu1 %1870, %v1939_v3   ;;  %146 = vperm.xlu0 %1869, %v1925_v1  }
  0x26   :  { %156 = vperm.xlu1 %1870, %v1920_v0   ;;  %161 = vperm.xlu0 %1869, %v1934_v2  }
  0x2a   :  { %166 = vperm.xlu1 %1870, %v1953_v6   ;;  %171 = vperm.xlu0 %1869, %v1948_v5  }
  0x2e   :  { %176 = vperm.xlu1 %1870, %v1967_v8   ;;  %181 = vperm.xlu0 %1869, %v1962_v7  }
  0x32   :  { %186 = vperm.xlu1 %1870, %v1981_v10   ;;  %191 = vperm.xlu0 %1869, %v1976_v9  }
  0x36   :  { %196 = vperm.xlu1 %1870, %v1995_v12   ;;  %201 = vperm.xlu0 %1869, %v1990_v11  }
  0x3a   :  { %206 = vperm.xlu1 %1870, %v2009_v14   ;;  %211 = vperm.xlu0 %1869, %v2004_v13  }
  0x3e   :  { %216 = vperm.xlu1 %1870, %v2023_v16   ;;  %221 = vperm.xlu0 %1869, %v2018_v15  }
  0x42   :  { %336 = vrot.lane.b32.xlu1 %v2048_v17, %s1893_s13  ;;  %339 = vrot.lane.b32.xlu0 %v2053_v18, %s1893_s13 }
  0x46   :  { %342 = vrot.lane.b32.xlu1 %v2062_v19, %s1893_s13  ;;  %345 = vrot.lane.b32.xlu0 %v2067_v20, %s1893_s13 }
  0x4a   :  { %348 = vrot.lane.b32.xlu1 %v2076_v21, %s1893_s13  ;;  %351 = vrot.lane.b32.xlu0 %v2081_v22, %s1893_s13 }
  0x4e   :  { %354 = vrot.lane.b32.xlu1 %v2090_v23, %s1893_s13  ;;  %357 = vrot.lane.b32.xlu0 %v2095_v24, %s1893_s13 }
  0x52   :  { %360 = vrot.lane.b32.xlu1 %v2104_v25, %s1893_s13  ;;  %363 = vrot.lane.b32.xlu0 %v2109_v26, %s1893_s13 }
  0x56   :  { %366 = vrot.lane.b32.xlu1 %v2118_v27, %s1893_s13 }
  0x74   :  { %v49_v28 = vpop.permute.xlu0 %48  ;;  %v55_v29 = vpop.permute.xlu1 %54 }
  0x75   :  { %v50_v30 = vsel %vm47_vm0, %v49_v28, %v1925_v1  ;;  %v56_v31 = vsel %vm47_vm0, %v55_v29, %v1920_v0 }
  0x76   :  { %96 = vrot.lane.b32.xlu0 %v50_v30, %s1893_s13 }
  0x78   :  { %v52_v32 = vpop.permute.xlu0 %51  ;;  %v58_v33 = vpop.permute.xlu1 %57 }
  0x79   :  { %v53_v34 = vsel %vm47_vm0, %v52_v32, %v1939_v3  ;;  %v59_v35 = vsel %vm47_vm0, %v58_v33, %v1934_v2 }
  0x7a   :  { %100 = vrot.lane.b32.xlu0 %v56_v31, %s1893_s13  ;;  %98 = vrot.lane.b32.xlu1 %v53_v34, %s1893_s13 }
  0x7c   :  { %v61_v36 = vpop.permute.xlu0 %60  ;;  %v64_v37 = vpop.permute.xlu1 %63 }
  0x7d   :  { %v62_v38 = vsel %vm47_vm0, %v61_v36, %v1953_v6  ;;  %v65_v39 = vsel %vm47_vm0, %v64_v37, %v1948_v5 }
  0x7e   :  { %102 = vrot.lane.b32.xlu1 %v59_v35, %s1893_s13  ;;  %104 = vrot.lane.b32.xlu0 %v62_v38, %s1893_s13 }
  0x80   :  { %v67_v40 = vpop.permute.xlu0 %66  ;;  %v70_v41 = vpop.permute.xlu1 %69 }
  0x81   :  { %v68_v42 = vsel %vm47_vm0, %v67_v40, %v1967_v8  ;;  %v71_v43 = vsel %vm47_vm0, %v70_v41, %v1962_v7 }
  0x82   :  { %106 = vrot.lane.b32.xlu1 %v65_v39, %s1893_s13  ;;  %108 = vrot.lane.b32.xlu0 %v68_v42, %s1893_s13 }
  0x84   :  { %v73_v44 = vpop.permute.xlu0 %72  ;;  %v76_v45 = vpop.permute.xlu1 %75 }
  0x85   :  { %v74_v46 = vsel %vm47_vm0, %v73_v44, %v1981_v10  ;;  %v77_v47 = vsel %vm47_vm0, %v76_v45, %v1976_v9 }
  0x86   :  { %110 = vrot.lane.b32.xlu1 %v71_v43, %s1893_s13  ;;  %112 = vrot.lane.b32.xlu0 %v74_v46, %s1893_s13 }
  0x88   :  { %v79_v48 = vpop.permute.xlu0 %78  ;;  %v82_v49 = vpop.permute.xlu1 %81 }
  0x89   :  { %v80_v50 = vsel %vm47_vm0, %v79_v48, %v1995_v12  ;;  %v83_v51 = vsel %vm47_vm0, %v82_v49, %v1990_v11 }
  0x8a   :  { %114 = vrot.lane.b32.xlu1 %v77_v47, %s1893_s13  ;;  %116 = vrot.lane.b32.xlu0 %v80_v50, %s1893_s13 }
  0x8c   :  { %v85_v52 = vpop.permute.xlu0 %84  ;;  %v88_v53 = vpop.permute.xlu1 %87 }
  0x8d   :  { %v86_v54 = vsel %vm47_vm0, %v85_v52, %v2009_v14  ;;  %v89_v55 = vsel %vm47_vm0, %v88_v53, %v2004_v13 }
  0x8e   :  { %118 = vrot.lane.b32.xlu1 %v83_v51, %s1893_s13  ;;  %120 = vrot.lane.b32.xlu0 %v86_v54, %s1893_s13 }
  0x90   :  { %v91_v56 = vpop.permute.xlu0 %90  ;;  %v94_v57 = vpop.permute.xlu1 %93 }
  0x91   :  { %v92_v58 = vsel %vm47_vm0, %v91_v56, %v2023_v16  ;;  %v95_v59 = vsel %vm47_vm0, %v94_v57, %v2018_v15 }
  0x92   :  { %122 = vrot.lane.b32.xlu1 %v89_v55, %s1893_s13  ;;  %124 = vrot.lane.b32.xlu0 %v92_v58, %s1893_s13 }
  0x96   :  { %126 = vrot.lane.b32.xlu1 %v95_v59, %s1893_s13  ;;  %369 = vrot.lane.b32.xlu0 %v2172_v60, %s1893_s13 }
  0x9a   :  { %372 = vrot.lane.b32.xlu1 %v2180_v61, %s1893_s13  ;;  %375 = vrot.lane.b32.xlu0 %v2185_v62, %s1893_s13 }
  0x9d   :  { %v2201_v28 = vpop.permute.xlu1 %151  ;;  %v2203_v29 = vpop.permute.xlu0 %146 }
  0x9e   :  { %4013 = vst [vmem:[#allocation15_spill] sm:$0xff] %v2201_v28  ;;  %4014 = vst [vmem:[#allocation16_spill] sm:$0xff] %v2203_v29  ;;  %378 = vrot.lane.b32.xlu1 %v2194_v63, %s1893_s13  ;;  %381 = vrot.lane.b32.xlu0 %v2199_v4, %s1893_s13 }
  0xa1   :  { %v2209_v30 = vpop.permute.xlu1 %156  ;;  %v2211_v31 = vpop.permute.xlu0 %161 }
  0xa2   :  { %4015 = vst [vmem:[#allocation17_spill] sm:$0xff] %v2209_v30  ;;  %4016 = vst [vmem:[#allocation18_spill] sm:$0xff] %v2211_v31 }
  0xa5   :  { %v2213_v32 = vpop.permute.xlu1 %166  ;;  %v2215_v33 = vpop.permute.xlu0 %171 }
  0xa6   :  { %4017 = vst [vmem:[#allocation19_spill] sm:$0xff] %v2213_v32  ;;  %4018 = vst [vmem:[#allocation20_spill] sm:$0xff] %v2215_v33 }
  0xa9   :  { %v2217_v34 = vpop.permute.xlu1 %176  ;;  %v2219_v35 = vpop.permute.xlu0 %181 }
  0xaa   :  { %4019 = vst [vmem:[#allocation21_spill] sm:$0xff] %v2217_v34  ;;  %4020 = vst [vmem:[#allocation22_spill] sm:$0xff] %v2219_v35 }
  0xad   :  { %v2221_v36 = vpop.permute.xlu1 %186  ;;  %v2223_v37 = vpop.permute.xlu0 %191 }
  0xae   :  { %4021 = vst [vmem:[#allocation23_spill] sm:$0xff] %v2221_v36  ;;  %4022 = vst [vmem:[#allocation24_spill] sm:$0xff] %v2223_v37 }
  0xb1   :  { %v2225_v38 = vpop.permute.xlu1 %196  ;;  %v2227_v39 = vpop.permute.xlu0 %201 }
  0xb2   :  { %4023 = vst [vmem:[#allocation25_spill] sm:$0xff] %v2225_v38  ;;  %4024 = vst [vmem:[#allocation26_spill] sm:$0xff] %v2227_v39 }
  0xb5   :  { %v2229_v40 = vpop.permute.xlu1 %206  ;;  %v2231_v41 = vpop.permute.xlu0 %211 }
  0xb6   :  { %4025 = vst [vmem:[#allocation27_spill] sm:$0xff] %v2229_v40  ;;  %4026 = vst [vmem:[#allocation28_spill] sm:$0xff] %v2231_v41 }
  0xb9   :  { %v2233_v42 = vpop.permute.xlu1 %216  ;;  %v2235_v43 = vpop.permute.xlu0 %221 }
  0xba   :  { %4027 = vst [vmem:[#allocation29_spill] sm:$0xff] %v2233_v42  ;;  %4028 = vst [vmem:[#allocation30_spill] sm:$0xff] %v2235_v43 }
  0xbd   :  { %v337_v44 = vpop.permute.xlu1 %336  ;;  %v340_v45 = vpop.permute.xlu0 %339 }
  0xbe   :  { %v338_v46 = vsel %vm47_vm0, %v337_v44, %v2048_v17  ;;  %v341_v47 = vsel %vm47_vm0, %v340_v45, %v2053_v18 }
  0xbf   :  { %384 = vrot.lane.b32.xlu1 %v338_v46, %s1893_s13  ;;  %386 = vrot.lane.b32.xlu0 %v341_v47, %s1893_s13 }
  0xc1   :  { %v343_v48 = vpop.permute.xlu1 %342  ;;  %v346_v49 = vpop.permute.xlu0 %345 }
  0xc2   :  { %v344_v50 = vsel %vm47_vm0, %v343_v48, %v2062_v19  ;;  %v347_v51 = vsel %vm47_vm0, %v346_v49, %v2067_v20 }
  0xc3   :  { %388 = vrot.lane.b32.xlu1 %v344_v50, %s1893_s13  ;;  %390 = vrot.lane.b32.xlu0 %v347_v51, %s1893_s13 }
  0xc5   :  { %v349_v52 = vpop.permute.xlu1 %348  ;;  %v352_v53 = vpop.permute.xlu0 %351 }
  0xc6   :  { %v350_v54 = vsel %vm47_vm0, %v349_v52, %v2076_v21  ;;  %v353_v55 = vsel %vm47_vm0, %v352_v53, %v2081_v22 }
  0xc7   :  { %392 = vrot.lane.b32.xlu1 %v350_v54, %s1893_s13  ;;  %394 = vrot.lane.b32.xlu0 %v353_v55, %s1893_s13 }
  0xc9   :  { %v355_v56 = vpop.permute.xlu1 %354  ;;  %v358_v57 = vpop.permute.xlu0 %357 }
  0xca   :  { %v356_v58 = vsel %vm47_vm0, %v355_v56, %v2090_v23  ;;  %v359_v59 = vsel %vm47_vm0, %v358_v57, %v2095_v24 }
  0xcb   :  { %396 = vrot.lane.b32.xlu1 %v356_v58, %s1893_s13  ;;  %398 = vrot.lane.b32.xlu0 %v359_v59, %s1893_s13 }
  0xcd   :  { %v361_v44 = vpop.permute.xlu1 %360  ;;  %v364_v45 = vpop.permute.xlu0 %363 }
  0xce   :  { %v362_v46 = vsel %vm47_vm0, %v361_v44, %v2104_v25  ;;  %v365_v47 = vsel %vm47_vm0, %v364_v45, %v2109_v26 }
  0xcf   :  { %400 = vrot.lane.b32.xlu1 %v362_v46, %s1893_s13  ;;  %402 = vrot.lane.b32.xlu0 %v365_v47, %s1893_s13 }
  0xd1   :  { %v367_v48 = vpop.permute.xlu1 %366 }
  0xd2   :  { %v368_v49 = vsel %vm47_vm0, %v367_v48, %v2118_v27 }
  0xd3   :  { %404 = vrot.lane.b32.xlu1 %v368_v49, %s1893_s13 }
  0xe8   :  { %v97_v50 = vpop.permute.xlu0 %96 }
  0xec   :  { %v99_v51 = vpop.permute.xlu1 %98  ;;  %v101_v52 = vpop.permute.xlu0 %100 }
  0xf0   :  { %v103_v53 = vpop.permute.xlu1 %102  ;;  %v105_v54 = vpop.permute.xlu0 %104 }
  0xf4   :  { %v107_v55 = vpop.permute.xlu1 %106  ;;  %v109_v56 = vpop.permute.xlu0 %108 }
  0xf8   :  { %v111_v57 = vpop.permute.xlu1 %110  ;;  %v113_v58 = vpop.permute.xlu0 %112 }
  0xfc   :  { %v115_v59 = vpop.permute.xlu1 %114  ;;  %v117_v44 = vpop.permute.xlu0 %116 }
 0x100   :  { %v119_v45 = vpop.permute.xlu1 %118  ;;  %v2270_v46 = vpop.permute.xlu0 %120 }
 0x104   :  { %v2272_v47 = vpop.permute.xlu1 %122  ;;  %v2274_v42 = vpop.permute.xlu0 %124 }
 0x108   :  { %v2276_v48 = vpop.permute.xlu1 %126  ;;  %v370_v49 = vpop.permute.xlu0 %369 }
 0x109   :  { %v371_v43 = vsel %vm47_vm0, %v370_v49, %v2172_v60 }
 0x10a   :  { %406 = vrot.lane.b32.xlu0 %v371_v43, %s1893_s13 }
 0x10c   :  { %v373_v40 = vpop.permute.xlu1 %372  ;;  %v376_v41 = vpop.permute.xlu0 %375 }
 0x10d   :  { %v374_v38 = vsel %vm47_vm0, %v373_v40, %v2180_v61  ;;  %v377_v39 = vsel %vm47_vm0, %v376_v41, %v2185_v62  ;;  %v2339_v40 = vsel %vm47_vm0, %v107_v55, %v1948_v5  ;;  %v2347_v41 = vsel %vm47_vm0, %v109_v56, %v1967_v8 }
 0x10e   :  { %408 = vrot.lane.b32.xlu1 %v374_v38, %s1893_s13  ;;  %410 = vrot.lane.b32.xlu0 %v377_v39, %s1893_s13  ;;  %v2327_v38 = vsel %vm47_vm0, %v103_v53, %v1934_v2  ;;  %v2335_v39 = vsel %vm47_vm0, %v105_v54, %v1953_v6  ;;  %4034 = vst [vmem:[#allocation36_spill] sm:$0xff] %v2339_v40  ;;  %4035 = vst [vmem:[#allocation37_spill] sm:$0xff] %v2347_v41 }
 0x10f   :  { %4032 = vst [vmem:[#allocation34_spill] sm:$0xff] %v2327_v38  ;;  %4033 = vst [vmem:[#allocation35_spill] sm:$0xff] %v2335_v39  ;;  %v2371_v54 = vsel %vm47_vm0, %v117_v44, %v1995_v12  ;;  %v2375_v55 = vsel %vm47_vm0, %v119_v45, %v1990_v11  ;;  %v2398_v45 = vsel %vm47_vm0, %v2274_v42, %v2023_v16 }
 0x110   :  { %v379_v36 = vpop.permute.xlu1 %378  ;;  %v382_v37 = vpop.permute.xlu0 %381  ;;  %4039 = vst [vmem:[#allocation41_spill] sm:$0xff] %v2371_v54  ;;  %4040 = vst [vmem:[#allocation42_spill] sm:$0xff] %v2375_v55 }
 0x111   :  { %v380_v34 = vsel %vm47_vm0, %v379_v36, %v2194_v63  ;;  %v383_v43 = vsel %vm47_vm0, %v382_v37, %v2199_v4  ;;  %v2315_v36 = vsel %vm47_vm0, %v99_v51, %v1939_v3  ;;  %v2323_v37 = vsel %vm47_vm0, %v101_v52, %v1920_v0  ;;  %4043 = vst [vmem:[#allocation45_spill] sm:$0xff] %v2398_v45 }
 0x112   :  { %412 = vrot.lane.b32.xlu1 %v380_v34, %s1893_s13  ;;  %414 = vrot.lane.b32.xlu0 %v383_v43, %s1893_s13  ;;  %v2311_v34 = vsel %vm47_vm0, %v97_v50, %v1925_v1  ;;  %4030 = vst [vmem:[#allocation32_spill] sm:$0xff] %v2315_v36  ;;  %4031 = vst [vmem:[#allocation33_spill] sm:$0xff] %v2323_v37  ;;  %v2351_v50 = vsel %vm47_vm0, %v111_v57, %v1962_v7 }
 0x113   :  { %4029 = vst [vmem:[#allocation31_spill] sm:$0xff] %v2311_v34  ;;  %4036 = vst [vmem:[#allocation38_spill] sm:$0xff] %v2351_v50  ;;  %v2359_v51 = vsel %vm47_vm0, %v113_v58, %v1981_v10  ;;  %v2363_v52 = vsel %vm47_vm0, %v115_v59, %v1976_v9  ;;  %v2384_v57 = vsel %vm47_vm0, %v2270_v46, %v2009_v14 }
 0x114   :  { %4037 = vst [vmem:[#allocation39_spill] sm:$0xff] %v2359_v51  ;;  %4038 = vst [vmem:[#allocation40_spill] sm:$0xff] %v2363_v52  ;;  %v2389_v58 = vsel %vm47_vm0, %v2272_v47, %v2004_v13  ;;  %v2403_v46 = vsel %vm47_vm0, %v2276_v48, %v2018_v15  ;;  %v44_v13 = vlaneseq }
 0x115   :  { %4041 = vst [vmem:[#allocation43_spill] sm:$0xff] %v2384_v57  ;;  %4042 = vst [vmem:[#allocation44_spill] sm:$0xff] %v2389_v58 }
 0x116   :  { %434 = vperm.xlu1 %1870, %v2048_v17   ;;  %439 = vperm.xlu0 %1869, %v2053_v18   ;;  %4044 = vst [vmem:[#allocation46_spill] sm:$0xff] %v2403_v46  ;;  %v2497_v10 = vand.u32 127, %v44_v13 }
 0x118   :  { %vm46_vm1 = vcmp.ge.s32.totalorder %v2497_v10, 15  ;;  %vm608_vm2 = vcmp.ge.s32.totalorder %v2497_v10, 14  ;;  %vm1169_vm3 = vcmp.ge.s32.totalorder %v2497_v10, 12  ;;  %vm1730_vm4 = vcmp.ge.s32.totalorder %v2497_v10, 8 }
 0x11a   :  { %444 = vperm.xlu1 %1870, %v2062_v19   ;;  %449 = vperm.xlu0 %1869, %v2067_v20  }
 0x11e   :  { %454 = vperm.xlu1 %1870, %v2076_v21   ;;  %459 = vperm.xlu0 %1869, %v2081_v22  }
 0x122   :  { %464 = vperm.xlu1 %1870, %v2090_v23   ;;  %469 = vperm.xlu0 %1869, %v2095_v24  }
 0x126   :  { %474 = vperm.xlu1 %1870, %v2104_v25   ;;  %479 = vperm.xlu0 %1869, %v2109_v26  }
 0x12a   :  { %484 = vperm.xlu1 %1870, %v2118_v27   ;;  %489 = vperm.xlu0 %1869, %v2172_v60  }
 0x12e   :  { %494 = vperm.xlu1 %1870, %v2180_v61   ;;  %499 = vperm.xlu0 %1869, %v2185_v62  }
 0x131   :  { %v385_v53 = vpop.permute.xlu1 %384  ;;  %v387_v56 = vpop.permute.xlu0 %386 }
 0x132   :  { %504 = vperm.xlu1 %1870, %v2194_v63   ;;  %509 = vperm.xlu0 %1869, %v2199_v4   ;;  %v416_v49 = vsel %vm47_vm0, %v385_v53, %v2048_v17  ;;  %v417_v43 = vsel %vm47_vm0, %v387_v56, %v2053_v18 }
 0x135   :  { %v389_v59 = vpop.permute.xlu1 %388  ;;  %v391_v44 = vpop.permute.xlu0 %390 }
 0x136   :  { %240 = vrot.lane.b32.xlu1 %v2311_v34, %s1895_s1  ;;  %242 = vrot.lane.b32.xlu0 %v2315_v36, %s1895_s1  ;;  %v418_v48 = vsel %vm47_vm0, %v389_v59, %v2062_v19 }
 0x139   :  { %v393_v47 = vpop.permute.xlu1 %392  ;;  %v395_v42 = vpop.permute.xlu0 %394 }
 0x13a   :  { %244 = vrot.lane.b32.xlu1 %v2323_v37, %s1895_s1  ;;  %246 = vrot.lane.b32.xlu0 %v2327_v38, %s1895_s1  ;;  %v420_v56 = vsel %vm47_vm0, %v393_v47, %v2076_v21 }
 0x13d   :  { %v399_v53 = vpop.permute.xlu0 %398 }
 0x13e   :  { %248 = vrot.lane.b32.xlu1 %v2335_v39, %s1895_s1  ;;  %250 = vrot.lane.b32.xlu0 %v2339_v40, %s1895_s1 }
 0x142   :  { %252 = vrot.lane.b32.xlu1 %v2347_v41, %s1895_s1  ;;  %254 = vrot.lane.b32.xlu0 %v2351_v50, %s1895_s1 }
 0x146   :  { %256 = vrot.lane.b32.xlu1 %v2359_v51, %s1895_s1  ;;  %258 = vrot.lane.b32.xlu0 %v2363_v52, %s1895_s1 }
 0x14a   :  { %260 = vrot.lane.b32.xlu1 %v2371_v54, %s1895_s1  ;;  %262 = vrot.lane.b32.xlu0 %v2375_v55, %s1895_s1 }
 0x14e   :  { %264 = vrot.lane.b32.xlu1 %v2384_v57, %s1895_s1  ;;  %266 = vrot.lane.b32.xlu0 %v2389_v58, %s1895_s1  ;;  %v397_v58 = vpop.permute.xlu1 %396 }
 0x152   :  { %268 = vrot.lane.b32.xlu1 %v2398_v45, %s1895_s1  ;;  %270 = vrot.lane.b32.xlu0 %v2403_v46, %s1895_s1  ;;  %v419_v45 = vsel %vm47_vm0, %v391_v44, %v2067_v20  ;;  %v401_v59 = vpop.permute.xlu1 %400  ;;  %v422_v44 = vsel %vm47_vm0, %v397_v58, %v2090_v23 }
 0x156   :  { %528 = vrot.lane.b32.xlu1 %v416_v49, %s1895_s1  ;;  %530 = vrot.lane.b32.xlu0 %v417_v43, %s1895_s1  ;;  %v421_v49 = vsel %vm47_vm0, %v395_v42, %v2081_v22  ;;  %v423_v43 = vsel %vm47_vm0, %v399_v53, %v2095_v24  ;;  %v405_v42 = vpop.permute.xlu1 %404 }
 0x157   :  { %v426_v58 = vsel %vm47_vm0, %v405_v42, %v2118_v27 }
 0x15a   :  { %532 = vrot.lane.b32.xlu1 %v418_v48, %s1895_s1  ;;  %534 = vrot.lane.b32.xlu0 %v419_v45, %s1895_s1  ;;  %v403_v48 = vpop.permute.xlu0 %402  ;;  %v424_v45 = vsel %vm47_vm0, %v401_v59, %v2104_v25 }
 0x15b   :  { %v425_v47 = vsel %vm47_vm0, %v403_v48, %v2109_v26 }
 0x15e   :  { %536 = vrot.lane.b32.xlu1 %v420_v56, %s1895_s1  ;;  %538 = vrot.lane.b32.xlu0 %v421_v49, %s1895_s1 }
 0x162   :  { %540 = vrot.lane.b32.xlu1 %v422_v44, %s1895_s1  ;;  %542 = vrot.lane.b32.xlu0 %v423_v43, %s1895_s1 }
 0x166   :  { %544 = vrot.lane.b32.xlu1 %v424_v45, %s1895_s1  ;;  %546 = vrot.lane.b32.xlu0 %v425_v47, %s1895_s1 }
 0x16a   :  { %548 = vrot.lane.b32.xlu1 %v426_v58, %s1895_s1 }
 0x17c   :  { %v407_v53 = vpop.permute.xlu0 %406 }
 0x17d   :  { %v427_v56 = vsel %vm47_vm0, %v407_v53, %v2172_v60 }
 0x17e   :  { %550 = vrot.lane.b32.xlu0 %v427_v56, %s1895_s1 }
 0x180   :  { %v409_v49 = vpop.permute.xlu1 %408  ;;  %v411_v59 = vpop.permute.xlu0 %410 }
 0x181   :  { %v428_v44 = vsel %vm47_vm0, %v409_v49, %v2180_v61  ;;  %v429_v43 = vsel %vm47_vm0, %v411_v59, %v2185_v62 }
 0x182   :  { %552 = vrot.lane.b32.xlu1 %v428_v44, %s1895_s1  ;;  %554 = vrot.lane.b32.xlu0 %v429_v43, %s1895_s1 }
 0x184   :  { %v413_v48 = vpop.permute.xlu1 %412  ;;  %v415_v45 = vpop.permute.xlu0 %414 }
 0x185   :  { %v430_v47 = vsel %vm47_vm0, %v413_v48, %v2194_v63  ;;  %v431_v42 = vsel %vm47_vm0, %v415_v45, %v2199_v4 }
 0x186   :  { %556 = vrot.lane.b32.xlu1 %v430_v47, %s1895_s1  ;;  %558 = vrot.lane.b32.xlu0 %v431_v42, %s1895_s1 }
 0x191   :  { %v435_v58 = vpop.permute.xlu1 %434  ;;  %v440_v53 = vpop.permute.xlu0 %439 }
 0x195   :  { %v445_v56 = vpop.permute.xlu1 %444  ;;  %v450_v49 = vpop.permute.xlu0 %449 }
 0x199   :  { %v455_v59 = vpop.permute.xlu1 %454  ;;  %v460_v44 = vpop.permute.xlu0 %459 }
 0x19d   :  { %v465_v46 = vpop.permute.xlu1 %464  ;;  %v470_v43 = vpop.permute.xlu0 %469 }
 0x1a1   :  { %v475_v57 = vpop.permute.xlu1 %474  ;;  %v480_v55 = vpop.permute.xlu0 %479 }
 0x1a5   :  { %v2457_v54 = vpop.permute.xlu1 %484  ;;  %v2459_v48 = vpop.permute.xlu0 %489 }
 0x1a9   :  { %v2461_v52 = vpop.permute.xlu1 %494  ;;  %v2463_v45 = vpop.permute.xlu0 %499 }
 0x1ad   :  { %v2465_v47 = vpop.permute.xlu1 %504  ;;  %v2467_v42 = vpop.permute.xlu0 %509 }
 0x1b1   :  { %v2469_v51 = vpop.permute.xlu1 %240  ;;  %v2471_v50 = vpop.permute.xlu0 %242 }
 0x1b5   :  { %v2473_v41 = vpop.permute.xlu1 %244  ;;  %v2475_v40 = vpop.permute.xlu0 %246 }
 0x1b9   :  { %v2477_v39 = vpop.permute.xlu1 %248  ;;  %v2479_v38 = vpop.permute.xlu0 %250 }
 0x1bd   :  { %v2481_v37 = vpop.permute.xlu1 %252  ;;  %v2483_v36 = vpop.permute.xlu0 %254 }
 0x1c1   :  { %v2485_v34 = vpop.permute.xlu1 %256  ;;  %v2487_v16 = vpop.permute.xlu0 %258 }
 0x1c2   :  { %4045 = vst [vmem:[#allocation47_spill] sm:$0xff] %v2485_v34 }
 0x1c5   :  { %v2489_v15 = vpop.permute.xlu1 %260  ;;  %v2491_v14 = vpop.permute.xlu0 %262 }
 0x1c6   :  { %4046 = vst [vmem:[#allocation48_spill] sm:$0xff] %v2489_v15  ;;  %4047 = vst [vmem:[#allocation49_spill] sm:$0xff] %v2491_v14 }
 0x1c9   :  { %v2493_v12 = vpop.permute.xlu1 %264  ;;  %v2495_v11 = vpop.permute.xlu0 %266 }
 0x1ca   :  { %4048 = vst [vmem:[#allocation50_spill] sm:$0xff] %v2493_v12 }
 0x1cd   :  { %v2499_v9 = vpop.permute.xlu1 %268  ;;  %v2501_v8 = vpop.permute.xlu0 %270 }
 0x1ce   :  { %4049 = vst [vmem:[#allocation51_spill] sm:$0xff] %v2499_v9  ;;  %4050 = vst [vmem:[#allocation52_spill] sm:$0xff] %v2501_v8 }
 0x1d1   :  { %v529_v34 = vpop.permute.xlu1 %528  ;;  %v531_v7 = vpop.permute.xlu0 %530 }
 0x1d2   :  { %v576_v15 = vsel %vm46_vm1, %v435_v58, %v529_v34  ;;  %v577_v14 = vsel %vm46_vm1, %v440_v53, %v531_v7 }
 0x1d3   :  { %v2509_v12 = vmul.f32 %v576_v15, %v2048_v17  ;;  %v2512_v13 = vmul.f32 %v577_v14, %v2053_v18 }
 0x1d5   :  { %897 = vrot.lane.b32.xlu1 %v2509_v12, %s1893_s13  ;;  %v533_v9 = vpop.permute.xlu1 %532  ;;  %900 = vrot.lane.b32.xlu0 %v2512_v13, %s1893_s13  ;;  %v535_v8 = vpop.permute.xlu0 %534 }
 0x1d6   :  { %v578_v34 = vsel %vm46_vm1, %v445_v56, %v533_v9  ;;  %v579_v7 = vsel %vm46_vm1, %v450_v49, %v535_v8 }
 0x1d7   :  { %v2523_v15 = vmul.f32 %v578_v34, %v2062_v19  ;;  %v2526_v14 = vmul.f32 %v579_v7, %v2067_v20 }
 0x1d9   :  { %903 = vrot.lane.b32.xlu1 %v2523_v15, %s1893_s13  ;;  %v537_v58 = vpop.permute.xlu1 %536  ;;  %906 = vrot.lane.b32.xlu0 %v2526_v14, %s1893_s13  ;;  %v539_v53 = vpop.permute.xlu0 %538 }
 0x1da   :  { %v580_v9 = vsel %vm46_vm1, %v455_v59, %v537_v58  ;;  %v581_v8 = vsel %vm46_vm1, %v460_v44, %v539_v53 }
 0x1db   :  { %v2537_v56 = vmul.f32 %v580_v9, %v2076_v21  ;;  %v2540_v49 = vmul.f32 %v581_v8, %v2081_v22 }
 0x1dd   :  { %909 = vrot.lane.b32.xlu1 %v2537_v56, %s1893_s13  ;;  %v541_v34 = vpop.permute.xlu1 %540  ;;  %912 = vrot.lane.b32.xlu0 %v2540_v49, %s1893_s13  ;;  %v543_v7 = vpop.permute.xlu0 %542 }
 0x1de   :  { %v582_v59 = vsel %vm46_vm1, %v465_v46, %v541_v34  ;;  %v583_v44 = vsel %vm46_vm1, %v470_v43, %v543_v7 }
 0x1df   :  { %v2551_v58 = vmul.f32 %v582_v59, %v2090_v23  ;;  %v2554_v53 = vmul.f32 %v583_v44, %v2095_v24 }
 0x1e1   :  { %915 = vrot.lane.b32.xlu1 %v2551_v58, %s1893_s13  ;;  %v545_v9 = vpop.permute.xlu1 %544  ;;  %918 = vrot.lane.b32.xlu0 %v2554_v53, %s1893_s13  ;;  %v547_v8 = vpop.permute.xlu0 %546 }
 0x1e2   :  { %v584_v46 = vsel %vm46_vm1, %v475_v57, %v545_v9  ;;  %v585_v43 = vsel %vm46_vm1, %v480_v55, %v547_v8 }
 0x1e3   :  { %v2565_v34 = vmul.f32 %v584_v46, %v2104_v25  ;;  %v2568_v7 = vmul.f32 %v585_v43, %v2109_v26 }
 0x1e5   :  { %921 = vrot.lane.b32.xlu1 %v2565_v34, %s1893_s13  ;;  %v549_v59 = vpop.permute.xlu1 %548  ;;  %924 = vrot.lane.b32.xlu0 %v2568_v7, %s1893_s13 }
 0x1e6   :  { %v586_v57 = vsel %vm46_vm1, %v2457_v54, %v549_v59 }
 0x1e7   :  { %v2578_v44 = vmul.f32 %v586_v57, %v2118_v27 }
 0x1e9   :  { %927 = vrot.lane.b32.xlu1 %v2578_v44, %s1893_s13 }
 0x1f0   :  { %v551_v55 = vpop.permute.xlu0 %550 }
 0x1f1   :  { %v587_v9 = vsel %vm46_vm1, %v2459_v48, %v551_v55  ;;  %v289_v55 = vsel %vm46_vm1, %v2201_v28, %v2471_v50 }
 0x1f2   :  { %v2586_v8 = vmul.f32 %v587_v9, %v2172_v60 }
 0x1f4   :  { %v553_v46 = vpop.permute.xlu1 %552  ;;  %930 = vrot.lane.b32.xlu0 %v2586_v8, %s1893_s13  ;;  %v555_v43 = vpop.permute.xlu0 %554 }
 0x1f5   :  { %v588_v54 = vsel %vm46_vm1, %v2461_v52, %v553_v46  ;;  %v589_v59 = vsel %vm46_vm1, %v2463_v45, %v555_v43  ;;  %v305_v43 = vmul.f32 %v289_v55, %v2053_v18 }
 0x1f6   :  { %v2597_v57 = vmul.f32 %v588_v54, %v2180_v61  ;;  %v2600_v48 = vmul.f32 %v589_v59, %v2185_v62  ;;  %v288_v59 = vsel %vm46_vm1, %v2203_v29, %v2469_v51  ;;  %v290_v51 = vsel %vm46_vm1, %v2209_v30, %v2473_v41 }
 0x1f7   :  { %v304_v18 = vmul.f32 %v288_v59, %v2048_v17  ;;  %v306_v17 = vmul.f32 %v290_v51, %v2062_v19  ;;  %v4056_v59 = vld [vmem:[#allocation49_spill] sm:$0xff] }
 0x1f8   :  { %933 = vrot.lane.b32.xlu1 %v2597_v57, %s1893_s13  ;;  %v557_v9 = vpop.permute.xlu1 %556  ;;  %936 = vrot.lane.b32.xlu0 %v2600_v48, %s1893_s13  ;;  %v559_v52 = vpop.permute.xlu0 %558 }
 0x1f9   :  { %v590_v45 = vsel %vm46_vm1, %v2465_v47, %v557_v9  ;;  %v591_v46 = vsel %vm46_vm1, %v2467_v42, %v559_v52  ;;  %v291_v47 = vsel %vm46_vm1, %v2211_v31, %v2475_v40  ;;  %v2637_v42 = vadd.f32 %v305_v43, %v1939_v3  ;;  %v4052_v52 = vld [vmem:[#allocation24_spill] sm:$0xff]  ;;  %v4055_v43 = vld [vmem:[#allocation23_spill] sm:$0xff] }
 0x1fa   :  { %v2618_v50 = vmul.f32 %v590_v45, %v2194_v63  ;;  %v2621_v54 = vmul.f32 %v591_v46, %v2199_v4  ;;  %v307_v55 = vmul.f32 %v291_v47, %v2067_v20  ;;  %v293_v40 = vsel %vm46_vm1, %v2215_v33, %v2479_v38  ;;  %v4054_v46 = vld [vmem:[#allocation47_spill] sm:$0xff]  ;;  %v4057_v47 = vld [vmem:[#allocation26_spill] sm:$0xff] }
 0x1fb   :  { %v2652_v3 = vadd.f32 %v304_v18, %v1925_v1  ;;  %v309_v41 = vmul.f32 %v293_v40, %v2081_v22  ;;  %v292_v38 = vsel %vm46_vm1, %v2213_v32, %v2477_v39  ;;  %v295_v9 = vsel %vm46_vm1, %v2219_v35, %v2483_v36  ;;  %v4051_v39 = vld [vmem:[#allocation21_spill] sm:$0xff] }
 0x1fc   :  { %939 = vrot.lane.b32.xlu1 %v2618_v50, %s1893_s13  ;;  %942 = vrot.lane.b32.xlu0 %v2621_v54, %s1893_s13  ;;  %v2656_v20 = vadd.f32 %v307_v55, %v1934_v2  ;;  %v2672_v1 = vadd.f32 %v306_v17, %v1920_v0  ;;  %v308_v2 = vmul.f32 %v292_v38, %v2076_v21  ;;  %v4053_v21 = vld [vmem:[#allocation5_spill] sm:$0xff]  ;;  %v4059_v55 = vld [vmem:[#allocation7_spill] sm:$0xff]  ;;  %v4060_v17 = vld [vmem:[#allocation48_spill] sm:$0xff] }
 0x1fd   :  { %v2676_v19 = vadd.f32 %v309_v41, %v1948_v5  ;;  %v311_v22 = vmul.f32 %v295_v9, %v2095_v24  ;;  %v294_v36 = vsel %vm46_vm1, %v4051_v39, %v2481_v37  ;;  %v297_v45 = vsel %vm46_vm1, %v4052_v52, %v2487_v16  ;;  %v4061_v41 = vld [vmem:[#allocation25_spill] sm:$0xff]  ;;  %v4062_v9 = vld [vmem:[#allocation28_spill] sm:$0xff] }
 0x1fe   :  { %v2692_v0 = vadd.f32 %v308_v2, %v1953_v6  ;;  %v310_v5 = vmul.f32 %v294_v36, %v2090_v23  ;;  %v313_v37 = vmul.f32 %v297_v45, %v2109_v26  ;;  %v296_v16 = vsel %vm46_vm1, %v4055_v43, %v4054_v46  ;;  %v4058_v6 = vld [vmem:[#allocation6_spill] sm:$0xff]  ;;  %v4064_v36 = vld [vmem:[#allocation9_spill] sm:$0xff]  ;;  %v4067_v46 = vld [vmem:[#allocation52_spill] sm:$0xff] }
 0x1ff   :  { %v2696_v24 = vadd.f32 %v311_v22, %v4053_v21  ;;  %v299_v18 = vsel %vm46_vm1, %v4057_v47, %v4056_v59  ;;  %v312_v26 = vmul.f32 %v296_v16, %v2104_v25  ;;  %v298_v38 = vsel %vm46_vm1, %v4061_v41, %v4060_v17  ;;  %v4063_v25 = vld [vmem:[#allocation8_spill] sm:$0xff]  ;;  %v4065_v21 = vld [vmem:[#allocation50_spill] sm:$0xff]  ;;  %v4072_v17 = vld [vmem:[#allocation29_spill] sm:$0xff] }
 0x200   :  { %995 = vperm.xlu1 %1870, %v2509_v12   ;;  %612 = vrot.lane.b32.xlu0 %v2637_v42, %s1893_s13  ;;  %v2712_v23 = vadd.f32 %v310_v5, %v4058_v6  ;;  %v2716_v51 = vadd.f32 %v313_v37, %v4059_v55  ;;  %v315_v40 = vmul.f32 %v299_v18, %v2172_v60  ;;  %v4066_v37 = vld [vmem:[#allocation27_spill] sm:$0xff]  ;;  %v4068_v16 = vld [vmem:[#allocation30_spill] sm:$0xff]  ;;  %v4086_v43 = vld [vmem:[#allocation41_spill] sm:$0xff] }
 0x201   :  { %v301_v2 = vsel %vm46_vm1, %v4062_v9, %v2495_v11  ;;  %v2732_v22 = vadd.f32 %v312_v26, %v4063_v25  ;;  %v314_v60 = vmul.f32 %v298_v38, %v2118_v27  ;;  %v300_v11 = vsel %vm46_vm1, %v4066_v37, %v4065_v21  ;;  %v4069_v27 = vld [vmem:[#allocation10_spill] sm:$0xff]  ;;  %v4070_v6 = vld [vmem:[#allocation11_spill] sm:$0xff]  ;;  %v4082_v37 = vld [vmem:[#allocation37_spill] sm:$0xff] }
 0x202   :  { %v2736_v45 = vadd.f32 %v315_v40, %v4064_v36  ;;  %v317_v5 = vmul.f32 %v301_v2, %v2185_v62  ;;  %v303_v59 = vsel %vm46_vm1, %v4068_v16, %v4067_v46  ;;  %v316_v62 = vmul.f32 %v300_v11, %v2180_v61  ;;  %v4071_v40 = vld [vmem:[#allocation51_spill] sm:$0xff]  ;;  %v4073_v2 = vld [vmem:[#allocation12_spill] sm:$0xff] }
 0x203   :  { %v2752_v18 = vadd.f32 %v314_v60, %v4069_v27  ;;  %v319_v55 = vmul.f32 %v303_v59, %v2199_v4  ;;  %v302_v38 = vsel %vm46_vm1, %v4072_v17, %v4071_v40  ;;  %v4074_v60 = vld [vmem:[#allocation13_spill] sm:$0xff]  ;;  %v4075_v4 = vld [vmem:[#allocation14_spill] sm:$0xff]  ;;  %v4080_v17 = vld [vmem:[#allocation35_spill] sm:$0xff] }
 0x204   :  { %609 = vrot.lane.b32.xlu1 %v2652_v3, %s1893_s13  ;;  %618 = vrot.lane.b32.xlu0 %v2656_v20, %s1893_s13  ;;  %v2756_v26 = vadd.f32 %v317_v5, %v4070_v6  ;;  %v2768_v25 = vadd.f32 %v316_v62, %v4073_v2  ;;  %v318_v61 = vmul.f32 %v302_v38, %v2194_v63  ;;  %v4076_v6 = vld [vmem:[#allocation31_spill] sm:$0xff]  ;;  %v4078_v2 = vld [vmem:[#allocation33_spill] sm:$0xff]  ;;  %v4081_v16 = vld [vmem:[#allocation36_spill] sm:$0xff] }
 0x205   :  { %v2772_v36 = vadd.f32 %v319_v55, %v4074_v60  ;;  %v4077_v55 = vld [vmem:[#allocation32_spill] sm:$0xff]  ;;  %v4084_v41 = vld [vmem:[#allocation39_spill] sm:$0xff] }
 0x206   :  { %v2779_v5 = vadd.f32 %v318_v61, %v4075_v4  ;;  %v4079_v61 = vld [vmem:[#allocation34_spill] sm:$0xff] }
 0x208   :  { %615 = vrot.lane.b32.xlu1 %v2672_v1, %s1893_s13  ;;  %624 = vrot.lane.b32.xlu0 %v2676_v19, %s1893_s13 }
 0x20c   :  { %621 = vrot.lane.b32.xlu1 %v2692_v0, %s1893_s13  ;;  %630 = vrot.lane.b32.xlu0 %v2696_v24, %s1893_s13 }
 0x210   :  { %627 = vrot.lane.b32.xlu1 %v2712_v23, %s1893_s13  ;;  %636 = vrot.lane.b32.xlu0 %v2716_v51, %s1893_s13 }
 0x214   :  { %633 = vrot.lane.b32.xlu1 %v2732_v22, %s1893_s13  ;;  %642 = vrot.lane.b32.xlu0 %v2736_v45, %s1893_s13 }
 0x218   :  { %639 = vrot.lane.b32.xlu1 %v2752_v18, %s1893_s13  ;;  %648 = vrot.lane.b32.xlu0 %v2756_v26, %s1893_s13 }
 0x21c   :  { %645 = vrot.lane.b32.xlu1 %v2768_v25, %s1893_s13  ;;  %654 = vrot.lane.b32.xlu0 %v2772_v36, %s1893_s13 }
 0x220   :  { %651 = vrot.lane.b32.xlu1 %v2779_v5, %s1893_s13  ;;  %712 = vperm.xlu0 %1869, %v2637_v42  }
 0x224   :  { %707 = vperm.xlu1 %1870, %v2652_v3   ;;  %722 = vperm.xlu0 %1869, %v2656_v20  }
 0x228   :  { %717 = vperm.xlu1 %1870, %v2672_v1   ;;  %732 = vperm.xlu0 %1869, %v2676_v19  }
 0x22c   :  { %727 = vperm.xlu1 %1870, %v2692_v0   ;;  %742 = vperm.xlu0 %1869, %v2696_v24  }
 0x230   :  { %737 = vperm.xlu1 %1870, %v2712_v23   ;;  %752 = vperm.xlu0 %1869, %v2716_v51  }
 0x234   :  { %747 = vperm.xlu1 %1870, %v2732_v22   ;;  %762 = vperm.xlu0 %1869, %v2736_v45  }
 0x238   :  { %757 = vperm.xlu1 %1870, %v2752_v18   ;;  %772 = vperm.xlu0 %1869, %v2756_v26  }
 0x23c   :  { %767 = vperm.xlu1 %1870, %v2768_v25   ;;  %782 = vperm.xlu0 %1869, %v2772_v36  }
 0x240   :  { %777 = vperm.xlu1 %1870, %v2779_v5   ;;  %1000 = vperm.xlu0 %1869, %v2512_v13  }
 0x244   :  { %1005 = vperm.xlu1 %1870, %v2523_v15   ;;  %1010 = vperm.xlu0 %1869, %v2526_v14  }
 0x247   :  { %v901_v63 = vpop.permute.xlu0 %900  ;;  %v898_v21 = vpop.permute.xlu1 %897 }
 0x248   :  { %1015 = vperm.xlu1 %1870, %v2537_v56   ;;  %1020 = vperm.xlu0 %1869, %v2540_v49  }
 0x24b   :  { %v907_v11 = vpop.permute.xlu0 %906  ;;  %v904_v46 = vpop.permute.xlu1 %903 }
 0x24c   :  { %1025 = vperm.xlu1 %1870, %v2551_v58   ;;  %1030 = vperm.xlu0 %1869, %v2554_v53  }
 0x24f   :  { %v913_v59 = vpop.permute.xlu0 %912  ;;  %v910_v27 = vpop.permute.xlu1 %909 }
 0x250   :  { %1035 = vperm.xlu1 %1870, %v2565_v34   ;;  %1040 = vperm.xlu0 %1869, %v2568_v7  }
 0x253   :  { %v919_v62 = vpop.permute.xlu0 %918  ;;  %v916_v40 = vpop.permute.xlu1 %915 }
 0x254   :  { %1045 = vperm.xlu1 %1870, %v2578_v44   ;;  %1050 = vperm.xlu0 %1869, %v2586_v8  }
 0x257   :  { %v925_v38 = vpop.permute.xlu0 %924  ;;  %v922_v4 = vpop.permute.xlu1 %921 }
 0x258   :  { %1055 = vperm.xlu1 %1870, %v2597_v57   ;;  %1060 = vperm.xlu0 %1869, %v2600_v48  }
 0x25b   :  { %v928_v9 = vpop.permute.xlu1 %927 }
 0x25c   :  { %1065 = vperm.xlu1 %1870, %v2618_v50   ;;  %1070 = vperm.xlu0 %1869, %v2621_v54  }
 0x260   :  { %1731 = vrot.lane.b32.xlu1 %v4076_v6, %s1896_s18  ;;  %1733 = vrot.lane.b32.xlu0 %v4077_v55, %s1896_s18  ;;  %v4083_v55 = vld [vmem:[#allocation38_spill] sm:$0xff] }
 0x264   :  { %1735 = vrot.lane.b32.xlu1 %v4078_v2, %s1896_s18  ;;  %1737 = vrot.lane.b32.xlu0 %v4079_v61, %s1896_s18  ;;  %v4085_v61 = vld [vmem:[#allocation40_spill] sm:$0xff] }
 0x266   :  { %v931_v60 = vpop.permute.xlu0 %930 }
 0x268   :  { %1739 = vrot.lane.b32.xlu1 %v4080_v17, %s1896_s18  ;;  %1741 = vrot.lane.b32.xlu0 %v4081_v16, %s1896_s18  ;;  %v902_v16 = vsel %vm47_vm0, %v901_v63, %v2512_v13  ;;  %v905_v63 = vsel %vm47_vm0, %v904_v46, %v2523_v15  ;;  %v917_v46 = vsel %vm47_vm0, %v916_v40, %v2551_v58 }
 0x269   :  { %v929_v40 = vsel %vm47_vm0, %v928_v9, %v2578_v44 }
 0x26a   :  { %v937_v6 = vpop.permute.xlu0 %936  ;;  %v934_v47 = vpop.permute.xlu1 %933 }
 0x26c   :  { %1743 = vrot.lane.b32.xlu1 %v4082_v37, %s1896_s18  ;;  %1745 = vrot.lane.b32.xlu0 %v4083_v55, %s1896_s18  ;;  %v899_v55 = vsel %vm47_vm0, %v898_v21, %v2509_v12  ;;  %v911_v21 = vsel %vm47_vm0, %v910_v27, %v2537_v56 }
 0x26e   :  { %v943_v2 = vpop.permute.xlu0 %942  ;;  %v940_v52 = vpop.permute.xlu1 %939 }
 0x270   :  { %1747 = vrot.lane.b32.xlu1 %v4084_v41, %s1896_s18  ;;  %1749 = vrot.lane.b32.xlu0 %v4085_v61, %s1896_s18  ;;  %v908_v41 = vsel %vm47_vm0, %v907_v11, %v2526_v14  ;;  %v920_v11 = vsel %vm47_vm0, %v919_v62, %v2554_v53  ;;  %v923_v62 = vsel %vm47_vm0, %v922_v4, %v2565_v34 }
 0x271   :  { %v944_v4 = vsel %vm47_vm0, %v943_v2, %v2621_v54 }
 0x272   :  { %v613_v17 = vpop.permute.xlu0 %612 }
 0x274   :  { %1751 = vrot.lane.b32.xlu1 %v4086_v43, %s1896_s18  ;;  %947 = vrot.lane.b32.xlu0 %v902_v16, %s1893_s13  ;;  %v914_v43 = vsel %vm47_vm0, %v913_v59, %v2540_v49  ;;  %v926_v59 = vsel %vm47_vm0, %v925_v38, %v2568_v7  ;;  %v938_v38 = vsel %vm47_vm0, %v937_v6, %v2600_v48 }
 0x275   :  { %v941_v6 = vsel %vm47_vm0, %v940_v52, %v2618_v50 }
 0x276   :  { %v619_v37 = vpop.permute.xlu0 %618 }
 0x278   :  { %945 = vrot.lane.b32.xlu1 %v899_v55, %s1893_s13  ;;  %951 = vrot.lane.b32.xlu0 %v908_v41, %s1893_s13 }
 0x27a   :  { %v625_v61 = vpop.permute.xlu0 %624 }
 0x27b   :  { %v2849_v16 = vpop.permute.xlu1 %995  ;;  %v626_v52 = vsel %vm47_vm0, %v625_v61, %v2676_v19 }
 0x27c   :  { %949 = vrot.lane.b32.xlu1 %v905_v63, %s1893_s13  ;;  %955 = vrot.lane.b32.xlu0 %v914_v43, %s1893_s13  ;;  %v932_v43 = vsel %vm47_vm0, %v931_v60, %v2586_v8  ;;  %v935_v60 = vsel %vm47_vm0, %v934_v47, %v2597_v57  ;;  %v620_v47 = vsel %vm47_vm0, %v619_v37, %v2656_v20 }
 0x27e   :  { %v631_v55 = vpop.permute.xlu0 %630 }
 0x27f   :  { %v610_v41 = vpop.permute.xlu1 %609  ;;  %v632_v37 = vsel %vm47_vm0, %v631_v55, %v2696_v24 }
 0x280   :  { %953 = vrot.lane.b32.xlu1 %v911_v21, %s1893_s13  ;;  %959 = vrot.lane.b32.xlu0 %v920_v11, %s1893_s13  ;;  %v611_v2 = vsel %vm47_vm0, %v610_v41, %v2652_v3 }
 0x282   :  { %v637_v27 = vpop.permute.xlu0 %636 }
 0x283   :  { %v616_v63 = vpop.permute.xlu1 %615  ;;  %v638_v61 = vsel %vm47_vm0, %v637_v27, %v2716_v51 }
 0x284   :  { %957 = vrot.lane.b32.xlu1 %v917_v46, %s1893_s13  ;;  %963 = vrot.lane.b32.xlu0 %v926_v59, %s1893_s13 }
 0x286   :  { %v643_v11 = vpop.permute.xlu0 %642 }
 0x287   :  { %v622_v21 = vpop.permute.xlu1 %621 }
 0x288   :  { %961 = vrot.lane.b32.xlu1 %v923_v62, %s1893_s13  ;;  %967 = vrot.lane.b32.xlu0 %v932_v43, %s1893_s13  ;;  %v614_v62 = vsel %vm47_vm0, %v613_v17, %v2637_v42  ;;  %v617_v17 = vsel %vm47_vm0, %v616_v63, %v2672_v1  ;;  %v623_v41 = vsel %vm47_vm0, %v622_v21, %v2692_v0 }
 0x289   :  { %v644_v21 = vsel %vm47_vm0, %v643_v11, %v2736_v45 }
 0x28a   :  { %v649_v9 = vpop.permute.xlu0 %648 }
 0x28b   :  { %v628_v46 = vpop.permute.xlu1 %627 }
 0x28c   :  { %965 = vrot.lane.b32.xlu1 %v929_v40, %s1893_s13  ;;  %971 = vrot.lane.b32.xlu0 %v938_v38, %s1893_s13  ;;  %v629_v63 = vsel %vm47_vm0, %v628_v46, %v2712_v23  ;;  %v650_v46 = vsel %vm47_vm0, %v649_v9, %v2756_v26 }
 0x28e   :  { %v655_v40 = vpop.permute.xlu0 %654 }
 0x28f   :  { %v634_v59 = vpop.permute.xlu1 %633 }
 0x290   :  { %969 = vrot.lane.b32.xlu1 %v935_v60, %s1893_s13  ;;  %975 = vrot.lane.b32.xlu0 %v944_v4, %s1893_s13 }
 0x293   :  { %v640_v43 = vpop.permute.xlu1 %639 }
 0x294   :  { %973 = vrot.lane.b32.xlu1 %v941_v6, %s1893_s13  ;;  %659 = vrot.lane.b32.xlu0 %v614_v62, %s1893_s13 }
 0x297   :  { %v646_v38 = vpop.permute.xlu1 %645 }
 0x298   :  { %657 = vrot.lane.b32.xlu1 %v611_v2, %s1893_s13  ;;  %663 = vrot.lane.b32.xlu0 %v620_v47, %s1893_s13  ;;  %v635_v2 = vsel %vm47_vm0, %v634_v59, %v2732_v22  ;;  %v656_v59 = vsel %vm47_vm0, %v655_v40, %v2772_v36  ;;  %v4096_v40 = vld [vmem:[#allocation42_spill] sm:$0xff] }
 0x29b   :  { %v652_v60 = vpop.permute.xlu1 %651  ;;  %v2899_v4 = vpop.permute.xlu0 %712 }
 0x29c   :  { %661 = vrot.lane.b32.xlu1 %v617_v17, %s1893_s13  ;;  %667 = vrot.lane.b32.xlu0 %v626_v52, %s1893_s13  ;;  %v641_v17 = vsel %vm47_vm0, %v640_v43, %v2752_v18  ;;  %v653_v43 = vsel %vm47_vm0, %v652_v60, %v2779_v5 }
 0x29f   :  { %v2907_v6 = vpop.permute.xlu1 %707  ;;  %v2909_v62 = vpop.permute.xlu0 %722 }
 0x2a0   :  { %665 = vrot.lane.b32.xlu1 %v623_v41, %s1893_s13  ;;  %671 = vrot.lane.b32.xlu0 %v632_v37, %s1893_s13  ;;  %v647_v41 = vsel %vm47_vm0, %v646_v38, %v2768_v25 }
 0x2a3   :  { %v2917_v47 = vpop.permute.xlu1 %717  ;;  %v2919_v55 = vpop.permute.xlu0 %732 }
 0x2a4   :  { %4087 = vst [vmem:[#allocation5_spill] sm:$0xff] %v2919_v55  ;;  %669 = vrot.lane.b32.xlu1 %v629_v63, %s1893_s13  ;;  %675 = vrot.lane.b32.xlu0 %v638_v61, %s1893_s13 }
 0x2a7   :  { %v2927_v52 = vpop.permute.xlu1 %727  ;;  %v2929_v27 = vpop.permute.xlu0 %742 }
 0x2a8   :  { %4088 = vst [vmem:[#allocation47_spill] sm:$0xff] %v2927_v52  ;;  %4089 = vst [vmem:[#allocation49_spill] sm:$0xff] %v2929_v27  ;;  %673 = vrot.lane.b32.xlu1 %v635_v2, %s1893_s13  ;;  %679 = vrot.lane.b32.xlu0 %v644_v21, %s1893_s13 }
 0x2ab   :  { %v2937_v37 = vpop.permute.xlu1 %737  ;;  %v2939_v11 = vpop.permute.xlu0 %752 }
 0x2ac   :  { %4090 = vst [vmem:[#allocation6_spill] sm:$0xff] %v2937_v37  ;;  %4091 = vst [vmem:[#allocation7_spill] sm:$0xff] %v2939_v11  ;;  %677 = vrot.lane.b32.xlu1 %v641_v17, %s1893_s13  ;;  %683 = vrot.lane.b32.xlu0 %v650_v46, %s1893_s13  ;;  %v4099_v46 = vld [vmem:[#allocation43_spill] sm:$0xff]  ;;  %v4100_v17 = vld [vmem:[#allocation44_spill] sm:$0xff] }
 0x2af   :  { %v2947_v61 = vpop.permute.xlu1 %747  ;;  %v2949_v9 = vpop.permute.xlu0 %762 }
 0x2b0   :  { %4092 = vst [vmem:[#allocation48_spill] sm:$0xff] %v2947_v61  ;;  %4093 = vst [vmem:[#allocation8_spill] sm:$0xff] %v2949_v9  ;;  %681 = vrot.lane.b32.xlu1 %v647_v41, %s1893_s13  ;;  %687 = vrot.lane.b32.xlu0 %v656_v59, %s1893_s13 }
 0x2b3   :  { %v2955_v63 = vpop.permute.xlu1 %757  ;;  %v2957_v21 = vpop.permute.xlu0 %772 }
 0x2b4   :  { %4094 = vst [vmem:[#allocation9_spill] sm:$0xff] %v2955_v63  ;;  %4095 = vst [vmem:[#allocation50_spill] sm:$0xff] %v2957_v21  ;;  %685 = vrot.lane.b32.xlu1 %v653_v43, %s1893_s13  ;;  %1753 = vrot.lane.b32.xlu0 %v4096_v40, %s1896_s18 }
 0x2b7   :  { %v2962_v38 = vpop.permute.xlu1 %767  ;;  %v2964_v2 = vpop.permute.xlu0 %782 }
 0x2b8   :  { %4097 = vst [vmem:[#allocation52_spill] sm:$0xff] %v2962_v38  ;;  %4098 = vst [vmem:[#allocation10_spill] sm:$0xff] %v2964_v2  ;;  %1755 = vrot.lane.b32.xlu1 %v4099_v46, %s1896_s18  ;;  %1757 = vrot.lane.b32.xlu0 %v4100_v17, %s1896_s18 }
 0x2bb   :  { %v2970_v60 = vpop.permute.xlu1 %777  ;;  %v2972_v59 = vpop.permute.xlu0 %1000 }
 0x2bc   :  { %4101 = vst [vmem:[#allocation11_spill] sm:$0xff] %v2970_v60 }
 0x2bf   :  { %v2974_v41 = vpop.permute.xlu1 %1005  ;;  %v2976_v43 = vpop.permute.xlu0 %1010 }
 0x2c3   :  { %v2978_v35 = vpop.permute.xlu1 %1015  ;;  %v2980_v40 = vpop.permute.xlu0 %1020 }
 0x2c7   :  { %v2982_v39 = vpop.permute.xlu1 %1025  ;;  %v2984_v32 = vpop.permute.xlu0 %1030 }
 0x2cb   :  { %v2986_v46 = vpop.permute.xlu1 %1035  ;;  %v2988_v33 = vpop.permute.xlu0 %1040 }
 0x2cf   :  { %v2990_v17 = vpop.permute.xlu1 %1045  ;;  %v2992_v30 = vpop.permute.xlu0 %1050 }
 0x2d3   :  { %v2994_v31 = vpop.permute.xlu1 %1055  ;;  %v2996_v29 = vpop.permute.xlu0 %1060 }
 0x2d7   :  { %v2998_v28 = vpop.permute.xlu1 %1065  ;;  %v3000_v60 = vpop.permute.xlu0 %1070 }
 0x2db   :  { %v3002_v2 = vpop.permute.xlu1 %1731  ;;  %v3004_v38 = vpop.permute.xlu0 %1733 }
 0x2dc   :  { %4102 = vst [vmem:[#allocation51_spill] sm:$0xff] %v3002_v2  ;;  %4103 = vst [vmem:[#allocation12_spill] sm:$0xff] %v3004_v38 }
 0x2df   :  { %v3006_v21 = vpop.permute.xlu1 %1735  ;;  %v3008_v63 = vpop.permute.xlu0 %1737 }
 0x2e0   :  { %4104 = vst [vmem:[#allocation13_spill] sm:$0xff] %v3006_v21  ;;  %4105 = vst [vmem:[#allocation14_spill] sm:$0xff] %v3008_v63 }
 0x2e3   :  { %v3010_v9 = vpop.permute.xlu1 %1739  ;;  %v3012_v61 = vpop.permute.xlu0 %1741 }
 0x2e4   :  { %4106 = vst [vmem:[#allocation31_spill] sm:$0xff] %v3010_v9  ;;  %4107 = vst [vmem:[#allocation32_spill] sm:$0xff] %v3012_v61 }
 0x2e7   :  { %v3014_v11 = vpop.permute.xlu1 %1743  ;;  %v3016_v37 = vpop.permute.xlu0 %1745 }
 0x2e8   :  { %4108 = vst [vmem:[#allocation33_spill] sm:$0xff] %v3014_v11  ;;  %4109 = vst [vmem:[#allocation34_spill] sm:$0xff] %v3016_v37 }
 0x2eb   :  { %v3018_v27 = vpop.permute.xlu1 %1747  ;;  %v3020_v52 = vpop.permute.xlu0 %1749 }
 0x2ec   :  { %4110 = vst [vmem:[#allocation35_spill] sm:$0xff] %v3018_v27  ;;  %4111 = vst [vmem:[#allocation36_spill] sm:$0xff] %v3020_v52 }
 0x2ef   :  { %v3022_v55 = vpop.permute.xlu1 %1751  ;;  %v948_v2 = vpop.permute.xlu0 %947 }
 0x2f0   :  { %4112 = vst [vmem:[#allocation37_spill] sm:$0xff] %v3022_v55  ;;  %v978_v21 = vsel %vm47_vm0, %v948_v2, %v2512_v13 }
 0x2f1   :  { %1091 = vrot.lane.b32.xlu0 %v978_v21, %s1897_s19 }
 0x2f3   :  { %v946_v9 = vpop.permute.xlu1 %945  ;;  %v952_v63 = vpop.permute.xlu0 %951 }
 0x2f4   :  { %v977_v11 = vsel %vm47_vm0, %v946_v9, %v2509_v12  ;;  %v980_v37 = vsel %vm47_vm0, %v952_v63, %v2526_v14 }
 0x2f5   :  { %1089 = vrot.lane.b32.xlu1 %v977_v11, %s1897_s19  ;;  %1095 = vrot.lane.b32.xlu0 %v980_v37, %s1897_s19 }
 0x2f7   :  { %v950_v55 = vpop.permute.xlu1 %949  ;;  %v956_v27 = vpop.permute.xlu0 %955 }
 0x2f8   :  { %v979_v2 = vsel %vm47_vm0, %v950_v55, %v2523_v15  ;;  %v982_v21 = vsel %vm47_vm0, %v956_v27, %v2540_v49 }
 0x2f9   :  { %1093 = vrot.lane.b32.xlu1 %v979_v2, %s1897_s19  ;;  %1099 = vrot.lane.b32.xlu0 %v982_v21, %s1897_s19 }
 0x2fb   :  { %v954_v9 = vpop.permute.xlu1 %953  ;;  %v960_v52 = vpop.permute.xlu0 %959 }
 0x2fc   :  { %v981_v63 = vsel %vm47_vm0, %v954_v9, %v2537_v56  ;;  %v984_v37 = vsel %vm47_vm0, %v960_v52, %v2554_v53 }
 0x2fd   :  { %1097 = vrot.lane.b32.xlu1 %v981_v63, %s1897_s19  ;;  %1103 = vrot.lane.b32.xlu0 %v984_v37, %s1897_s19 }
 0x2ff   :  { %v958_v55 = vpop.permute.xlu1 %957  ;;  %v964_v11 = vpop.permute.xlu0 %963 }
 0x300   :  { %v983_v27 = vsel %vm47_vm0, %v958_v55, %v2551_v58  ;;  %v986_v2 = vsel %vm47_vm0, %v964_v11, %v2568_v7 }
 0x301   :  { %1101 = vrot.lane.b32.xlu1 %v983_v27, %s1897_s19  ;;  %1107 = vrot.lane.b32.xlu0 %v986_v2, %s1897_s19 }
 0x303   :  { %v962_v21 = vpop.permute.xlu1 %961  ;;  %v968_v9 = vpop.permute.xlu0 %967 }
 0x304   :  { %v985_v52 = vsel %vm47_vm0, %v962_v21, %v2565_v34  ;;  %v988_v63 = vsel %vm47_vm0, %v968_v9, %v2586_v8 }
 0x305   :  { %1105 = vrot.lane.b32.xlu1 %v985_v52, %s1897_s19  ;;  %1111 = vrot.lane.b32.xlu0 %v988_v63, %s1897_s19 }
 0x307   :  { %v966_v37 = vpop.permute.xlu1 %965  ;;  %v972_v55 = vpop.permute.xlu0 %971 }
 0x308   :  { %v987_v11 = vsel %vm47_vm0, %v966_v37, %v2578_v44  ;;  %v990_v27 = vsel %vm47_vm0, %v972_v55, %v2600_v48 }
 0x309   :  { %1109 = vrot.lane.b32.xlu1 %v987_v11, %s1897_s19  ;;  %1115 = vrot.lane.b32.xlu0 %v990_v27, %s1897_s19 }
 0x30b   :  { %v970_v2 = vpop.permute.xlu1 %969  ;;  %v976_v21 = vpop.permute.xlu0 %975 }
 0x30c   :  { %v989_v9 = vsel %vm47_vm0, %v970_v2, %v2597_v57  ;;  %v992_v52 = vsel %vm47_vm0, %v976_v21, %v2621_v54 }
 0x30d   :  { %1113 = vrot.lane.b32.xlu1 %v989_v9, %s1897_s19  ;;  %1119 = vrot.lane.b32.xlu0 %v992_v52, %s1897_s19 }
 0x30f   :  { %v974_v63 = vpop.permute.xlu1 %973  ;;  %v660_v37 = vpop.permute.xlu0 %659 }
 0x310   :  { %v991_v55 = vsel %vm47_vm0, %v974_v63, %v2618_v50  ;;  %v690_v11 = vsel %vm47_vm0, %v660_v37, %v2637_v42 }
 0x311   :  { %1117 = vrot.lane.b32.xlu1 %v991_v55, %s1897_s19  ;;  %803 = vrot.lane.b32.xlu0 %v690_v11, %s1897_s19 }
 0x313   :  { %v658_v27 = vpop.permute.xlu1 %657  ;;  %v664_v2 = vpop.permute.xlu0 %663 }
 0x314   :  { %v689_v21 = vsel %vm47_vm0, %v658_v27, %v2652_v3  ;;  %v692_v9 = vsel %vm47_vm0, %v664_v2, %v2656_v20 }
 0x315   :  { %801 = vrot.lane.b32.xlu1 %v689_v21, %s1897_s19  ;;  %807 = vrot.lane.b32.xlu0 %v692_v9, %s1897_s19 }
 0x317   :  { %v662_v52 = vpop.permute.xlu1 %661  ;;  %v668_v63 = vpop.permute.xlu0 %667 }
 0x318   :  { %v691_v37 = vsel %vm47_vm0, %v662_v52, %v2672_v1  ;;  %v694_v55 = vsel %vm47_vm0, %v668_v63, %v2676_v19 }
 0x319   :  { %805 = vrot.lane.b32.xlu1 %v691_v37, %s1897_s19  ;;  %811 = vrot.lane.b32.xlu0 %v694_v55, %s1897_s19 }
 0x31b   :  { %v666_v11 = vpop.permute.xlu1 %665  ;;  %v672_v27 = vpop.permute.xlu0 %671 }
 0x31c   :  { %v693_v2 = vsel %vm47_vm0, %v666_v11, %v2692_v0  ;;  %v696_v21 = vsel %vm47_vm0, %v672_v27, %v2696_v24 }
 0x31d   :  { %809 = vrot.lane.b32.xlu1 %v693_v2, %s1897_s19  ;;  %815 = vrot.lane.b32.xlu0 %v696_v21, %s1897_s19 }
 0x31f   :  { %v670_v9 = vpop.permute.xlu1 %669  ;;  %v676_v52 = vpop.permute.xlu0 %675 }
 0x320   :  { %v695_v63 = vsel %vm47_vm0, %v670_v9, %v2712_v23  ;;  %v698_v37 = vsel %vm47_vm0, %v676_v52, %v2716_v51 }
 0x321   :  { %813 = vrot.lane.b32.xlu1 %v695_v63, %s1897_s19  ;;  %819 = vrot.lane.b32.xlu0 %v698_v37, %s1897_s19 }
 0x323   :  { %v674_v55 = vpop.permute.xlu1 %673  ;;  %v680_v11 = vpop.permute.xlu0 %679 }
 0x324   :  { %v697_v27 = vsel %vm47_vm0, %v674_v55, %v2732_v22  ;;  %v700_v2 = vsel %vm47_vm0, %v680_v11, %v2736_v45 }
 0x325   :  { %817 = vrot.lane.b32.xlu1 %v697_v27, %s1897_s19  ;;  %823 = vrot.lane.b32.xlu0 %v700_v2, %s1897_s19 }
 0x327   :  { %v678_v21 = vpop.permute.xlu1 %677  ;;  %v684_v9 = vpop.permute.xlu0 %683 }
 0x328   :  { %v699_v52 = vsel %vm47_vm0, %v678_v21, %v2752_v18  ;;  %v702_v63 = vsel %vm47_vm0, %v684_v9, %v2756_v26 }
 0x329   :  { %821 = vrot.lane.b32.xlu1 %v699_v52, %s1897_s19  ;;  %827 = vrot.lane.b32.xlu0 %v702_v63, %s1897_s19 }
 0x32b   :  { %v682_v37 = vpop.permute.xlu1 %681  ;;  %v688_v55 = vpop.permute.xlu0 %687 }
 0x32c   :  { %v701_v11 = vsel %vm47_vm0, %v682_v37, %v2768_v25  ;;  %v704_v27 = vsel %vm47_vm0, %v688_v55, %v2772_v36 }
 0x32d   :  { %825 = vrot.lane.b32.xlu1 %v701_v11, %s1897_s19  ;;  %831 = vrot.lane.b32.xlu0 %v704_v27, %s1897_s19 }
 0x32f   :  { %v686_v2 = vpop.permute.xlu1 %685  ;;  %v3120_v9 = vpop.permute.xlu0 %1753 }
 0x330   :  { %v703_v21 = vsel %vm47_vm0, %v686_v2, %v2779_v5  ;;  %4113 = vst [vmem:[#allocation38_spill] sm:$0xff] %v3120_v9 }
 0x331   :  { %829 = vrot.lane.b32.xlu1 %v703_v21, %s1897_s19 }
 0x333   :  { %v3122_v52 = vpop.permute.xlu0 %1757  ;;  %v3125_v63 = vpop.permute.xlu1 %1755 }
 0x334   :  { %4114 = vst [vmem:[#allocation39_spill] sm:$0xff] %v3122_v52  ;;  %4115 = vst [vmem:[#allocation40_spill] sm:$0xff] %v3125_v63 }
 0x363   :  { %v1092_v37 = vpop.permute.xlu0 %1091 }
 0x364   :  { %v1138_v55 = vsel %vm608_vm2, %v2972_v59, %v1092_v37 }
 0x365   :  { %v3131_v11 = vmul.f32 %v1138_v55, %v2512_v13 }
 0x367   :  { %v1090_v27 = vpop.permute.xlu1 %1089  ;;  %1461 = vrot.lane.b32.xlu0 %v3131_v11, %s1893_s13  ;;  %v1096_v2 = vpop.permute.xlu0 %1095 }
 0x368   :  { %v1137_v21 = vsel %vm608_vm2, %v2849_v16, %v1090_v27  ;;  %v1140_v63 = vsel %vm608_vm2, %v2976_v43, %v1096_v2 }
 0x369   :  { %v3142_v52 = vmul.f32 %v1137_v21, %v2509_v12  ;;  %v3145_v59 = vmul.f32 %v1140_v63, %v2526_v14 }
 0x36b   :  { %1458 = vrot.lane.b32.xlu1 %v3142_v52, %s1893_s13  ;;  %v1094_v37 = vpop.permute.xlu1 %1093  ;;  %1467 = vrot.lane.b32.xlu0 %v3145_v59, %s1893_s13  ;;  %v1100_v55 = vpop.permute.xlu0 %1099 }
 0x36c   :  { %v1139_v16 = vsel %vm608_vm2, %v2974_v41, %v1094_v37  ;;  %v1142_v43 = vsel %vm608_vm2, %v2980_v40, %v1100_v55 }
 0x36d   :  { %v3158_v27 = vmul.f32 %v1139_v16, %v2523_v15  ;;  %v3161_v63 = vmul.f32 %v1142_v43, %v2540_v49 }
 0x36f   :  { %1464 = vrot.lane.b32.xlu1 %v3158_v27, %s1893_s13  ;;  %v1098_v2 = vpop.permute.xlu1 %1097  ;;  %1473 = vrot.lane.b32.xlu0 %v3161_v63, %s1893_s13  ;;  %v1104_v21 = vpop.permute.xlu0 %1103 }
 0x370   :  { %v1141_v41 = vsel %vm608_vm2, %v2978_v35, %v1098_v2  ;;  %v1144_v40 = vsel %vm608_vm2, %v2984_v32, %v1104_v21 }
 0x371   :  { %v3174_v37 = vmul.f32 %v1141_v41, %v2537_v56  ;;  %v3177_v55 = vmul.f32 %v1144_v40, %v2554_v53 }
 0x373   :  { %1470 = vrot.lane.b32.xlu1 %v3174_v37, %s1893_s13  ;;  %v1102_v16 = vpop.permute.xlu1 %1101  ;;  %1479 = vrot.lane.b32.xlu0 %v3177_v55, %s1893_s13  ;;  %v1108_v43 = vpop.permute.xlu0 %1107 }
 0x374   :  { %v1143_v35 = vsel %vm608_vm2, %v2982_v39, %v1102_v16  ;;  %v1146_v32 = vsel %vm608_vm2, %v2988_v33, %v1108_v43 }
 0x375   :  { %v3190_v2 = vmul.f32 %v1143_v35, %v2551_v58  ;;  %v3193_v21 = vmul.f32 %v1146_v32, %v2568_v7 }
 0x377   :  { %1476 = vrot.lane.b32.xlu1 %v3190_v2, %s1893_s13  ;;  %v1106_v41 = vpop.permute.xlu1 %1105  ;;  %1485 = vrot.lane.b32.xlu0 %v3193_v21, %s1893_s13  ;;  %v1112_v40 = vpop.permute.xlu0 %1111 }
 0x378   :  { %v1145_v39 = vsel %vm608_vm2, %v2986_v46, %v1106_v41  ;;  %v1148_v33 = vsel %vm608_vm2, %v2992_v30, %v1112_v40 }
 0x379   :  { %v3206_v16 = vmul.f32 %v1145_v39, %v2565_v34  ;;  %v3209_v43 = vmul.f32 %v1148_v33, %v2586_v8 }
 0x37b   :  { %4116 = vst [vmem:[#allocation41_spill] sm:$0xff] %v3209_v43  ;;  %1482 = vrot.lane.b32.xlu1 %v3206_v16, %s1893_s13  ;;  %v1110_v35 = vpop.permute.xlu1 %1109  ;;  %1491 = vrot.lane.b32.xlu0 %v3209_v43, %s1893_s13  ;;  %v1116_v32 = vpop.permute.xlu0 %1115 }
 0x37c   :  { %v1147_v46 = vsel %vm608_vm2, %v2990_v17, %v1110_v35  ;;  %v1150_v30 = vsel %vm608_vm2, %v2996_v29, %v1116_v32 }
 0x37d   :  { %v3222_v41 = vmul.f32 %v1147_v46, %v2578_v44  ;;  %v3225_v40 = vmul.f32 %v1150_v30, %v2600_v48 }
 0x37f   :  { %4117 = vst [vmem:[#allocation42_spill] sm:$0xff] %v3222_v41  ;;  %4118 = vst [vmem:[#allocation43_spill] sm:$0xff] %v3225_v40  ;;  %1488 = vrot.lane.b32.xlu1 %v3222_v41, %s1893_s13  ;;  %v1114_v39 = vpop.permute.xlu1 %1113  ;;  %1497 = vrot.lane.b32.xlu0 %v3225_v40, %s1893_s13  ;;  %v1120_v33 = vpop.permute.xlu0 %1119 }
 0x380   :  { %v1149_v17 = vsel %vm608_vm2, %v2994_v31, %v1114_v39  ;;  %v1152_v29 = vsel %vm608_vm2, %v3000_v60, %v1120_v33 }
 0x381   :  { %v3238_v35 = vmul.f32 %v1149_v17, %v2597_v57  ;;  %v3241_v32 = vmul.f32 %v1152_v29, %v2621_v54 }
 0x383   :  { %4119 = vst [vmem:[#allocation44_spill] sm:$0xff] %v3238_v35  ;;  %4120 = vst [vmem:[#allocation53_spill] sm:$0xff] %v3241_v32  ;;  %1494 = vrot.lane.b32.xlu1 %v3238_v35, %s1893_s13  ;;  %v1118_v46 = vpop.permute.xlu1 %1117  ;;  %1503 = vrot.lane.b32.xlu0 %v3241_v32, %s1893_s13  ;;  %v804_v60 = vpop.permute.xlu0 %803 }
 0x384   :  { %v1151_v31 = vsel %vm608_vm2, %v2998_v28, %v1118_v46  ;;  %v850_v46 = vsel %vm608_vm2, %v2899_v4, %v804_v60 }
 0x385   :  { %v3251_v30 = vmul.f32 %v1151_v31, %v2618_v50  ;;  %v866_v9 = vmul.f32 %v850_v46, %v2512_v13 }
 0x387   :  { %4121 = vst [vmem:[#allocation54_spill] sm:$0xff] %v3251_v30  ;;  %1500 = vrot.lane.b32.xlu1 %v3251_v30, %s1893_s13  ;;  %1561 = vperm.xlu0 %1869, %v3131_v11   ;;  %v802_v39 = vpop.permute.xlu1 %801  ;;  %v808_v33 = vpop.permute.xlu0 %807  ;;  %v3281_v4 = vadd.f32 %v866_v9, %v2637_v42 }
 0x388   :  { %v849_v61 = vsel %vm608_vm2, %v2907_v6, %v802_v39  ;;  %v852_v38 = vsel %vm608_vm2, %v2909_v62, %v808_v33  ;;  %v4122_v39 = vld [vmem:[#allocation5_spill] sm:$0xff] }
 0x389   :  { %v865_v60 = vmul.f32 %v849_v61, %v2509_v12  ;;  %v868_v13 = vmul.f32 %v852_v38, %v2526_v14  ;;  %v4123_v38 = vld [vmem:[#allocation47_spill] sm:$0xff]  ;;  %v4124_v33 = vld [vmem:[#allocation49_spill] sm:$0xff] }
 0x38b   :  { %1556 = vperm.xlu1 %1870, %v3142_v52   ;;  %1571 = vperm.xlu0 %1869, %v3145_v59   ;;  %v806_v28 = vpop.permute.xlu1 %805  ;;  %v812_v17 = vpop.permute.xlu0 %811  ;;  %v3295_v42 = vadd.f32 %v865_v60, %v2652_v3  ;;  %v3298_v12 = vadd.f32 %v868_v13, %v2656_v20  ;;  %v4126_v60 = vld [vmem:[#allocation7_spill] sm:$0xff] }
 0x38c   :  { %v851_v6 = vsel %vm608_vm2, %v2917_v47, %v806_v28  ;;  %v854_v62 = vsel %vm608_vm2, %v4122_v39, %v812_v17  ;;  %v4127_v39 = vld [vmem:[#allocation48_spill] sm:$0xff] }
 0x38d   :  { %v867_v14 = vmul.f32 %v851_v6, %v2523_v15  ;;  %v870_v61 = vmul.f32 %v854_v62, %v2540_v49  ;;  %v4128_v62 = vld [vmem:[#allocation8_spill] sm:$0xff] }
 0x38f   :  { %1566 = vperm.xlu1 %1870, %v3158_v27   ;;  %1581 = vperm.xlu0 %1869, %v3161_v63   ;;  %v810_v29 = vpop.permute.xlu1 %809  ;;  %v816_v31 = vpop.permute.xlu0 %815  ;;  %v3313_v15 = vadd.f32 %v867_v14, %v2672_v1  ;;  %v3316_v49 = vadd.f32 %v870_v61, %v2676_v19 }
 0x390   :  { %v853_v9 = vsel %vm608_vm2, %v4123_v38, %v810_v29  ;;  %v856_v28 = vsel %vm608_vm2, %v4124_v33, %v816_v31  ;;  %v4125_v29 = vld [vmem:[#allocation6_spill] sm:$0xff] }
 0x391   :  { %v869_v3 = vmul.f32 %v853_v9, %v2537_v56  ;;  %v872_v20 = vmul.f32 %v856_v28, %v2554_v53  ;;  %v4130_v9 = vld [vmem:[#allocation50_spill] sm:$0xff] }
 0x393   :  { %1576 = vperm.xlu1 %1870, %v3174_v37   ;;  %1591 = vperm.xlu0 %1869, %v3177_v55   ;;  %v820_v46 = vpop.permute.xlu0 %819  ;;  %v3331_v1 = vadd.f32 %v869_v3, %v2692_v0  ;;  %v3334_v56 = vadd.f32 %v872_v20, %v2696_v24  ;;  %v4134_v20 = vld [vmem:[#allocation10_spill] sm:$0xff] }
 0x394   :  { %v858_v13 = vsel %vm608_vm2, %v4126_v60, %v820_v46  ;;  %v4137_v60 = vld [vmem:[#allocation11_spill] sm:$0xff] }
 0x395   :  { %v874_v19 = vmul.f32 %v858_v13, %v2568_v7 }
 0x397   :  { %1586 = vperm.xlu1 %1870, %v3190_v2   ;;  %1601 = vperm.xlu0 %1869, %v3193_v21   ;;  %v824_v17 = vpop.permute.xlu0 %823 }
 0x398   :  { %v860_v14 = vsel %vm608_vm2, %v4128_v62, %v824_v17  ;;  %v4133_v17 = vld [vmem:[#allocation52_spill] sm:$0xff] }
 0x399   :  { %v876_v24 = vmul.f32 %v860_v14, %v2586_v8 }
 0x39b   :  { %1596 = vperm.xlu1 %1870, %v3206_v16   ;;  %1611 = vperm.xlu0 %1869, %v3209_v43   ;;  %v814_v43 = vpop.permute.xlu1 %813  ;;  %v3370_v8 = vadd.f32 %v876_v24, %v2736_v45 }
 0x39c   :  { %v855_v31 = vsel %vm608_vm2, %v4125_v29, %v814_v43  ;;  %v828_v43 = vpop.permute.xlu0 %827 }
 0x39d   :  { %v871_v53 = vmul.f32 %v855_v31, %v2551_v58  ;;  %v3352_v58 = vadd.f32 %v874_v19, %v2716_v51  ;;  %v862_v33 = vsel %vm608_vm2, %v4130_v9, %v828_v43  ;;  %4132 = vst [vmem:[#allocation47_spill] sm:$0xff] %v3370_v8 }
 0x39e   :  { %v878_v51 = vmul.f32 %v862_v33, %v2600_v48 }
 0x39f   :  { %1606 = vperm.xlu1 %1870, %v3222_v41   ;;  %1621 = vperm.xlu0 %1869, %v3225_v40   ;;  %v818_v47 = vpop.permute.xlu1 %817  ;;  %v3349_v0 = vadd.f32 %v871_v53, %v2712_v23 }
 0x3a0   :  { %v857_v46 = vsel %vm608_vm2, %v4127_v39, %v818_v47  ;;  %v4129_v47 = vld [vmem:[#allocation9_spill] sm:$0xff]  ;;  %v832_v28 = vpop.permute.xlu0 %831 }
 0x3a1   :  { %v873_v7 = vmul.f32 %v857_v46, %v2565_v34  ;;  %v864_v29 = vsel %vm608_vm2, %v4134_v20, %v832_v28 }
 0x3a2   :  { %v880_v45 = vmul.f32 %v864_v29, %v2621_v54 }
 0x3a3   :  { %1616 = vperm.xlu1 %1870, %v3238_v35   ;;  %1631 = vperm.xlu0 %1869, %v3241_v32   ;;  %v822_v6 = vpop.permute.xlu1 %821  ;;  %v3367_v34 = vadd.f32 %v873_v7, %v2732_v22 }
 0x3a4   :  { %v859_v38 = vsel %vm608_vm2, %v4129_v47, %v822_v6 }
 0x3a5   :  { %4131 = vst [vmem:[#allocation5_spill] sm:$0xff] %v3367_v34  ;;  %v875_v23 = vmul.f32 %v859_v38, %v2578_v44  ;;  %v3388_v44 = vadd.f32 %v878_v51, %v2756_v26  ;;  %v3403_v26 = vadd.f32 %v880_v45, %v2772_v36 }
 0x3a7   :  { %1626 = vperm.xlu1 %1870, %v3251_v30   ;;  %1173 = vrot.lane.b32.xlu0 %v3281_v4, %s1893_s13  ;;  %v826_v61 = vpop.permute.xlu1 %825  ;;  %v3385_v22 = vadd.f32 %v875_v23, %v2752_v18  ;;  %4136 = vst [vmem:[#allocation6_spill] sm:$0xff] %v3388_v44  ;;  %4139 = vst [vmem:[#allocation48_spill] sm:$0xff] %v3403_v26 }
 0x3a8   :  { %v861_v3 = vsel %vm608_vm2, %v4133_v17, %v826_v61 }
 0x3a9   :  { %4135 = vst [vmem:[#allocation49_spill] sm:$0xff] %v3385_v22  ;;  %v877_v48 = vmul.f32 %v861_v3, %v2597_v57  ;;  %v4141_v3 = vld [vmem:[#allocation41_spill] sm:$0xff] }
 0x3ab   :  { %1170 = vrot.lane.b32.xlu1 %v3295_v42, %s1893_s13  ;;  %1179 = vrot.lane.b32.xlu0 %v3298_v12, %s1893_s13  ;;  %v830_v31 = vpop.permute.xlu1 %829  ;;  %v3400_v18 = vadd.f32 %v877_v48, %v2768_v25 }
 0x3ac   :  { %v863_v13 = vsel %vm608_vm2, %v4137_v60, %v830_v31 }
 0x3ad   :  { %4138 = vst [vmem:[#allocation7_spill] sm:$0xff] %v3400_v18  ;;  %v879_v57 = vmul.f32 %v863_v13, %v2618_v50 }
 0x3af   :  { %1176 = vrot.lane.b32.xlu1 %v3313_v15, %s1893_s13  ;;  %1185 = vrot.lane.b32.xlu0 %v3316_v49, %s1893_s13  ;;  %v3411_v54 = vadd.f32 %v879_v57, %v2779_v5 }
 0x3b1   :  { %4140 = vst [vmem:[#allocation8_spill] sm:$0xff] %v3411_v54 }
 0x3b3   :  { %1182 = vrot.lane.b32.xlu1 %v3331_v1, %s1893_s13  ;;  %1191 = vrot.lane.b32.xlu0 %v3334_v56, %s1893_s13 }
 0x3b7   :  { %1188 = vrot.lane.b32.xlu1 %v3349_v0, %s1893_s13  ;;  %1197 = vrot.lane.b32.xlu0 %v3352_v58, %s1893_s13 }
 0x3bb   :  { %1194 = vrot.lane.b32.xlu1 %v3367_v34, %s1893_s13  ;;  %1203 = vrot.lane.b32.xlu0 %v3370_v8, %s1893_s13 }
 0x3bf   :  { %1200 = vrot.lane.b32.xlu1 %v3385_v22, %s1893_s13  ;;  %1209 = vrot.lane.b32.xlu0 %v3388_v44, %s1893_s13 }
 0x3c3   :  { %1206 = vrot.lane.b32.xlu1 %v3400_v18, %s1893_s13  ;;  %1215 = vrot.lane.b32.xlu0 %v3403_v26, %s1893_s13 }
 0x3c7   :  { %1212 = vrot.lane.b32.xlu1 %v3411_v54, %s1893_s13  ;;  %1273 = vperm.xlu0 %1869, %v3281_v4  }
 0x3cb   :  { %1268 = vperm.xlu1 %1870, %v3295_v42   ;;  %1283 = vperm.xlu0 %1869, %v3298_v12  }
 0x3cf   :  { %1278 = vperm.xlu1 %1870, %v3313_v15   ;;  %1293 = vperm.xlu0 %1869, %v3316_v49  }
 0x3d3   :  { %1288 = vperm.xlu1 %1870, %v3331_v1   ;;  %1303 = vperm.xlu0 %1869, %v3334_v56  }
 0x3d7   :  { %1298 = vperm.xlu1 %1870, %v3349_v0   ;;  %1313 = vperm.xlu0 %1869, %v3352_v58  }
 0x3d9   :  { %v1462_v50 = vpop.permute.xlu0 %1461 }
 0x3da   :  { %v1463_v19 = vsel %vm47_vm0, %v1462_v50, %v3131_v11 }
 0x3db   :  { %1308 = vperm.xlu1 %1870, %v3367_v34   ;;  %1323 = vperm.xlu0 %1869, %v3370_v8  }
 0x3dd   :  { %v1459_v25 = vpop.permute.xlu1 %1458  ;;  %v1468_v36 = vpop.permute.xlu0 %1467 }
 0x3de   :  { %v1460_v39 = vsel %vm47_vm0, %v1459_v25, %v3142_v52  ;;  %v1469_v46 = vsel %vm47_vm0, %v1468_v36, %v3145_v59 }
 0x3df   :  { %1318 = vperm.xlu1 %1870, %v3385_v22   ;;  %1333 = vperm.xlu0 %1869, %v3388_v44  }
 0x3e1   :  { %v1465_v5 = vpop.permute.xlu1 %1464  ;;  %v1474_v6 = vpop.permute.xlu0 %1473 }
 0x3e2   :  { %v1466_v7 = vsel %vm47_vm0, %v1465_v5, %v3158_v27  ;;  %v1475_v24 = vsel %vm47_vm0, %v1474_v6, %v3161_v63 }
 0x3e3   :  { %1328 = vperm.xlu1 %1870, %v3400_v18   ;;  %1343 = vperm.xlu0 %1869, %v3403_v26  }
 0x3e5   :  { %v1471_v53 = vpop.permute.xlu1 %1470  ;;  %v1480_v43 = vpop.permute.xlu0 %1479 }
 0x3e6   :  { %v1472_v47 = vsel %vm47_vm0, %v1471_v53, %v3174_v37  ;;  %v1481_v38 = vsel %vm47_vm0, %v1480_v43, %v3177_v55 }
 0x3e7   :  { %1338 = vperm.xlu1 %1870, %v3411_v54   ;;  %1508 = vrot.lane.b32.xlu0 %v1463_v19, %s1893_s13 }
 0x3e9   :  { %v1477_v62 = vpop.permute.xlu1 %1476  ;;  %v1486_v14 = vpop.permute.xlu0 %1485 }
 0x3ea   :  { %v1478_v33 = vsel %vm47_vm0, %v1477_v62, %v3190_v2  ;;  %v1487_v28 = vsel %vm47_vm0, %v1486_v14, %v3193_v21 }
 0x3eb   :  { %1506 = vrot.lane.b32.xlu1 %v1460_v39, %s1893_s13  ;;  %1512 = vrot.lane.b32.xlu0 %v1469_v46, %s1893_s13 }
 0x3ed   :  { %v1483_v61 = vpop.permute.xlu1 %1482  ;;  %v1492_v9 = vpop.permute.xlu0 %1491 }
 0x3ee   :  { %v1484_v17 = vsel %vm47_vm0, %v1483_v61, %v3206_v16  ;;  %v1493_v20 = vsel %vm47_vm0, %v1492_v9, %v4141_v3 }
 0x3ef   :  { %1510 = vrot.lane.b32.xlu1 %v1466_v7, %s1893_s13  ;;  %1516 = vrot.lane.b32.xlu0 %v1475_v24, %s1893_s13 }
 0x3f1   :  { %v1489_v23 = vpop.permute.xlu1 %1488  ;;  %v1498_v51 = vpop.permute.xlu0 %1497 }
 0x3f2   :  { %v1490_v31 = vsel %vm47_vm0, %v1489_v23, %v3222_v41  ;;  %v1499_v48 = vsel %vm47_vm0, %v1498_v51, %v3225_v40 }
 0x3f3   :  { %1514 = vrot.lane.b32.xlu1 %v1472_v47, %s1893_s13  ;;  %1520 = vrot.lane.b32.xlu0 %v1481_v38, %s1893_s13 }
 0x3f5   :  { %v1495_v29 = vpop.permute.xlu1 %1494  ;;  %v1504_v45 = vpop.permute.xlu0 %1503 }
 0x3f6   :  { %v1496_v60 = vsel %vm47_vm0, %v1495_v29, %v3238_v35  ;;  %v1505_v13 = vsel %vm47_vm0, %v1504_v45, %v3241_v32 }
 0x3f7   :  { %1518 = vrot.lane.b32.xlu1 %v1478_v33, %s1893_s13  ;;  %1524 = vrot.lane.b32.xlu0 %v1487_v28, %s1893_s13 }
 0x3f9   :  { %v1501_v57 = vpop.permute.xlu1 %1500 }
 0x3fa   :  { %v1502_v25 = vsel %vm47_vm0, %v1501_v57, %v3251_v30 }
 0x3fb   :  { %1522 = vrot.lane.b32.xlu1 %v1484_v17, %s1893_s13  ;;  %1528 = vrot.lane.b32.xlu0 %v1493_v20, %s1893_s13 }
 0x3ff   :  { %1526 = vrot.lane.b32.xlu1 %v1490_v31, %s1893_s13  ;;  %1532 = vrot.lane.b32.xlu0 %v1499_v48, %s1893_s13 }
 0x402   :  { %v3474_v50 = vpop.permute.xlu0 %1561 }
 0x403   :  { %1530 = vrot.lane.b32.xlu1 %v1496_v60, %s1893_s13  ;;  %1536 = vrot.lane.b32.xlu0 %v1505_v13, %s1893_s13 }
 0x406   :  { %v3480_v36 = vpop.permute.xlu1 %1556  ;;  %v3482_v5 = vpop.permute.xlu0 %1571 }
 0x407   :  { %1534 = vrot.lane.b32.xlu1 %v1502_v25, %s1893_s13 }
 0x40a   :  { %v3485_v6 = vpop.permute.xlu1 %1566  ;;  %v3487_v53 = vpop.permute.xlu0 %1581 }
 0x40e   :  { %v3489_v19 = vpop.permute.xlu1 %1576  ;;  %v3491_v43 = vpop.permute.xlu0 %1591 }
 0x412   :  { %v3493_v39 = vpop.permute.xlu1 %1586  ;;  %v3495_v46 = vpop.permute.xlu0 %1601 }
 0x416   :  { %v3497_v62 = vpop.permute.xlu1 %1596  ;;  %v3499_v14 = vpop.permute.xlu0 %1611 }
 0x41a   :  { %v3501_v7 = vpop.permute.xlu1 %1606  ;;  %v3503_v24 = vpop.permute.xlu0 %1621 }
 0x41b   :  { %4142 = vst [vmem:[#allocation9_spill] sm:$0xff] %v3503_v24 }
 0x41e   :  { %v3505_v61 = vpop.permute.xlu1 %1616  ;;  %v3507_v47 = vpop.permute.xlu0 %1631 }
 0x41f   :  { %4143 = vst [vmem:[#allocation50_spill] sm:$0xff] %v3505_v61  ;;  %4144 = vst [vmem:[#allocation52_spill] sm:$0xff] %v3507_v47 }
 0x422   :  { %v3509_v38 = vpop.permute.xlu1 %1626  ;;  %v1174_v9 = vpop.permute.xlu0 %1173 }
 0x423   :  { %4145 = vst [vmem:[#allocation10_spill] sm:$0xff] %v3509_v38  ;;  %v1175_v33 = vsel %vm47_vm0, %v1174_v9, %v3281_v4 }
 0x424   :  { %1220 = vrot.lane.b32.xlu0 %v1175_v33, %s1893_s13 }
 0x426   :  { %v1171_v28 = vpop.permute.xlu1 %1170  ;;  %v1180_v23 = vpop.permute.xlu0 %1179 }
 0x427   :  { %v1172_v51 = vsel %vm47_vm0, %v1171_v28, %v3295_v42  ;;  %v1181_v17 = vsel %vm47_vm0, %v1180_v23, %v3298_v12 }
 0x428   :  { %1218 = vrot.lane.b32.xlu1 %v1172_v51, %s1893_s13  ;;  %1224 = vrot.lane.b32.xlu0 %v1181_v17, %s1893_s13 }
 0x42a   :  { %v1177_v20 = vpop.permute.xlu1 %1176  ;;  %v1186_v29 = vpop.permute.xlu0 %1185 }
 0x42b   :  { %v1178_v31 = vsel %vm47_vm0, %v1177_v20, %v3313_v15  ;;  %v1187_v48 = vsel %vm47_vm0, %v1186_v29, %v3316_v49 }
 0x42c   :  { %1222 = vrot.lane.b32.xlu1 %v1178_v31, %s1893_s13  ;;  %1228 = vrot.lane.b32.xlu0 %v1187_v48, %s1893_s13 }
 0x42e   :  { %v1183_v45 = vpop.permute.xlu1 %1182  ;;  %v1192_v60 = vpop.permute.xlu0 %1191 }
 0x42f   :  { %v1184_v13 = vsel %vm47_vm0, %v1183_v45, %v3331_v1  ;;  %v1193_v57 = vsel %vm47_vm0, %v1192_v60, %v3334_v56 }
 0x430   :  { %1226 = vrot.lane.b32.xlu1 %v1184_v13, %s1893_s13  ;;  %1232 = vrot.lane.b32.xlu0 %v1193_v57, %s1893_s13 }
 0x432   :  { %v1189_v25 = vpop.permute.xlu1 %1188  ;;  %v1198_v9 = vpop.permute.xlu0 %1197 }
 0x433   :  { %v1190_v33 = vsel %vm47_vm0, %v1189_v25, %v3349_v0  ;;  %v1199_v28 = vsel %vm47_vm0, %v1198_v9, %v3352_v58 }
 0x434   :  { %1230 = vrot.lane.b32.xlu1 %v1190_v33, %s1893_s13  ;;  %1236 = vrot.lane.b32.xlu0 %v1199_v28, %s1893_s13 }
 0x436   :  { %v1195_v23 = vpop.permute.xlu1 %1194  ;;  %v1204_v51 = vpop.permute.xlu0 %1203 }
 0x437   :  { %v1196_v17 = vsel %vm47_vm0, %v1195_v23, %v3367_v34  ;;  %v1205_v20 = vsel %vm47_vm0, %v1204_v51, %v3370_v8 }
 0x438   :  { %1234 = vrot.lane.b32.xlu1 %v1196_v17, %s1893_s13  ;;  %1240 = vrot.lane.b32.xlu0 %v1205_v20, %s1893_s13 }
 0x43a   :  { %v1201_v29 = vpop.permute.xlu1 %1200  ;;  %v1210_v31 = vpop.permute.xlu0 %1209 }
 0x43b   :  { %v1202_v48 = vsel %vm47_vm0, %v1201_v29, %v3385_v22  ;;  %v1211_v45 = vsel %vm47_vm0, %v1210_v31, %v3388_v44 }
 0x43c   :  { %1238 = vrot.lane.b32.xlu1 %v1202_v48, %s1893_s13  ;;  %1244 = vrot.lane.b32.xlu0 %v1211_v45, %s1893_s13 }
 0x43e   :  { %v1207_v60 = vpop.permute.xlu1 %1206  ;;  %v1216_v13 = vpop.permute.xlu0 %1215 }
 0x43f   :  { %v1208_v57 = vsel %vm47_vm0, %v1207_v60, %v3400_v18  ;;  %v1217_v25 = vsel %vm47_vm0, %v1216_v13, %v3403_v26 }
 0x440   :  { %1242 = vrot.lane.b32.xlu1 %v1208_v57, %s1893_s13  ;;  %1248 = vrot.lane.b32.xlu0 %v1217_v25, %s1893_s13 }
 0x442   :  { %v1213_v9 = vpop.permute.xlu1 %1212  ;;  %v3556_v33 = vpop.permute.xlu0 %1273 }
 0x443   :  { %v1214_v28 = vsel %vm47_vm0, %v1213_v9, %v3411_v54 }
 0x444   :  { %1246 = vrot.lane.b32.xlu1 %v1214_v28, %s1893_s13  ;;  %s1898_s13 = smov 124  }
 0x446   :  { %v3561_v23 = vpop.permute.xlu1 %1268  ;;  %v3563_v51 = vpop.permute.xlu0 %1283 }
 0x44a   :  { %v3565_v17 = vpop.permute.xlu1 %1278  ;;  %v3567_v20 = vpop.permute.xlu0 %1293 }
 0x44e   :  { %v3569_v29 = vpop.permute.xlu1 %1288  ;;  %v3571_v31 = vpop.permute.xlu0 %1303 }
 0x452   :  { %v3573_v48 = vpop.permute.xlu1 %1298  ;;  %v3575_v45 = vpop.permute.xlu0 %1313 }
 0x456   :  { %v3577_v60 = vpop.permute.xlu1 %1308  ;;  %v3579_v13 = vpop.permute.xlu0 %1323 }
 0x457   :  { %4146 = vst [vmem:[#allocation11_spill] sm:$0xff] %v3577_v60  ;;  %4147 = vst [vmem:[#allocation41_spill] sm:$0xff] %v3579_v13 }
 0x45a   :  { %v3581_v57 = vpop.permute.xlu1 %1318  ;;  %v3583_v25 = vpop.permute.xlu0 %1333 }
 0x45b   :  { %4148 = vst [vmem:[#allocation55_spill] sm:$0xff] %v3581_v57  ;;  %4149 = vst [vmem:[#allocation56_spill] sm:$0xff] %v3583_v25 }
 0x45e   :  { %v3585_v9 = vpop.permute.xlu1 %1328  ;;  %v3587_v28 = vpop.permute.xlu0 %1343 }
 0x45f   :  { %4150 = vst [vmem:[#allocation57_spill] sm:$0xff] %v3585_v9  ;;  %4151 = vst [vmem:[#allocation58_spill] sm:$0xff] %v3587_v28 }
 0x462   :  { %v3589_v38 = vpop.permute.xlu1 %1338  ;;  %v1509_v47 = vpop.permute.xlu0 %1508 }
 0x463   :  { %4152 = vst [vmem:[#allocation59_spill] sm:$0xff] %v3589_v38  ;;  %v1539_v61 = vsel %vm47_vm0, %v1509_v47, %v3131_v11 }
 0x464   :  { %1652 = vrot.lane.b32.xlu0 %v1539_v61, %s1898_s13 }
 0x466   :  { %v1507_v60 = vpop.permute.xlu1 %1506  ;;  %v1513_v24 = vpop.permute.xlu0 %1512 }
 0x467   :  { %v1538_v57 = vsel %vm47_vm0, %v1507_v60, %v3142_v52  ;;  %v1541_v25 = vsel %vm47_vm0, %v1513_v24, %v3145_v59 }
 0x468   :  { %1650 = vrot.lane.b32.xlu1 %v1538_v57, %s1898_s13  ;;  %1656 = vrot.lane.b32.xlu0 %v1541_v25, %s1898_s13 }
 0x46a   :  { %v1511_v38 = vpop.permute.xlu1 %1510  ;;  %v1517_v28 = vpop.permute.xlu0 %1516 }
 0x46b   :  { %v1540_v47 = vsel %vm47_vm0, %v1511_v38, %v3158_v27  ;;  %v1543_v61 = vsel %vm47_vm0, %v1517_v28, %v3161_v63 }
 0x46c   :  { %1654 = vrot.lane.b32.xlu1 %v1540_v47, %s1898_s13  ;;  %1660 = vrot.lane.b32.xlu0 %v1543_v61, %s1898_s13 }
 0x46e   :  { %v1515_v60 = vpop.permute.xlu1 %1514  ;;  %v1521_v9 = vpop.permute.xlu0 %1520 }
 0x46f   :  { %v1542_v24 = vsel %vm47_vm0, %v1515_v60, %v3174_v37  ;;  %v1545_v57 = vsel %vm47_vm0, %v1521_v9, %v3177_v55 }
 0x470   :  { %1658 = vrot.lane.b32.xlu1 %v1542_v24, %s1898_s13  ;;  %1664 = vrot.lane.b32.xlu0 %v1545_v57, %s1898_s13 }
 0x472   :  { %v1519_v38 = vpop.permute.xlu1 %1518  ;;  %v1525_v25 = vpop.permute.xlu0 %1524 }
 0x473   :  { %v1544_v28 = vsel %vm47_vm0, %v1519_v38, %v3190_v2  ;;  %v1547_v47 = vsel %vm47_vm0, %v1525_v25, %v3193_v21 }
 0x474   :  { %1662 = vrot.lane.b32.xlu1 %v1544_v28, %s1898_s13  ;;  %1668 = vrot.lane.b32.xlu0 %v1547_v47, %s1898_s13 }
 0x476   :  { %v1523_v61 = vpop.permute.xlu1 %1522  ;;  %v1529_v60 = vpop.permute.xlu0 %1528 }
 0x477   :  { %v1546_v9 = vsel %vm47_vm0, %v1523_v61, %v3206_v16  ;;  %v1549_v24 = vsel %vm47_vm0, %v1529_v60, %v4141_v3 }
 0x478   :  { %1666 = vrot.lane.b32.xlu1 %v1546_v9, %s1898_s13  ;;  %1672 = vrot.lane.b32.xlu0 %v1549_v24, %s1898_s13 }
 0x47a   :  { %v1527_v57 = vpop.permute.xlu1 %1526  ;;  %v1533_v38 = vpop.permute.xlu0 %1532 }
 0x47b   :  { %v1548_v25 = vsel %vm47_vm0, %v1527_v57, %v3222_v41  ;;  %v1551_v28 = vsel %vm47_vm0, %v1533_v38, %v3225_v40  ;;  %v4159_v41 = vld [vmem:[#allocation15_spill] sm:$0xff] }
 0x47c   :  { %1670 = vrot.lane.b32.xlu1 %v1548_v25, %s1898_s13  ;;  %1676 = vrot.lane.b32.xlu0 %v1551_v28, %s1898_s13 }
 0x47e   :  { %v1531_v47 = vpop.permute.xlu1 %1530  ;;  %v1537_v61 = vpop.permute.xlu0 %1536 }
 0x47f   :  { %v1550_v60 = vsel %vm47_vm0, %v1531_v47, %v3238_v35  ;;  %v1553_v9 = vsel %vm47_vm0, %v1537_v61, %v3241_v32 }
 0x480   :  { %1674 = vrot.lane.b32.xlu1 %v1550_v60, %s1898_s13  ;;  %1680 = vrot.lane.b32.xlu0 %v1553_v9, %s1898_s13 }
 0x482   :  { %v1535_v24 = vpop.permute.xlu1 %1534 }
 0x483   :  { %v1552_v57 = vsel %vm47_vm0, %v1535_v24, %v3251_v30 }
 0x484   :  { %1678 = vrot.lane.b32.xlu1 %v1552_v57, %s1898_s13 }
 0x496   :  { %v1221_v38 = vpop.permute.xlu0 %1220 }
 0x497   :  { %v1251_v25 = vsel %vm47_vm0, %v1221_v38, %v3281_v4 }
 0x498   :  { %1364 = vrot.lane.b32.xlu0 %v1251_v25, %s1898_s13 }
 0x49a   :  { %v1219_v28 = vpop.permute.xlu1 %1218  ;;  %v1225_v47 = vpop.permute.xlu0 %1224 }
 0x49b   :  { %v1250_v61 = vsel %vm47_vm0, %v1219_v28, %v3295_v42  ;;  %v1253_v60 = vsel %vm47_vm0, %v1225_v47, %v3298_v12 }
 0x49c   :  { %1362 = vrot.lane.b32.xlu1 %v1250_v61, %s1898_s13  ;;  %1368 = vrot.lane.b32.xlu0 %v1253_v60, %s1898_s13 }
 0x49e   :  { %v1223_v9 = vpop.permute.xlu1 %1222  ;;  %v1229_v24 = vpop.permute.xlu0 %1228 }
 0x49f   :  { %v1252_v57 = vsel %vm47_vm0, %v1223_v9, %v3313_v15  ;;  %v1255_v38 = vsel %vm47_vm0, %v1229_v24, %v3316_v49 }
 0x4a0   :  { %1366 = vrot.lane.b32.xlu1 %v1252_v57, %s1898_s13  ;;  %1372 = vrot.lane.b32.xlu0 %v1255_v38, %s1898_s13 }
 0x4a2   :  { %v1227_v25 = vpop.permute.xlu1 %1226  ;;  %v1233_v28 = vpop.permute.xlu0 %1232 }
 0x4a3   :  { %v1254_v47 = vsel %vm47_vm0, %v1227_v25, %v3331_v1  ;;  %v1257_v61 = vsel %vm47_vm0, %v1233_v28, %v3334_v56 }
 0x4a4   :  { %1370 = vrot.lane.b32.xlu1 %v1254_v47, %s1898_s13  ;;  %1376 = vrot.lane.b32.xlu0 %v1257_v61, %s1898_s13 }
 0x4a6   :  { %v1231_v60 = vpop.permute.xlu1 %1230  ;;  %v1237_v9 = vpop.permute.xlu0 %1236 }
 0x4a7   :  { %v1256_v24 = vsel %vm47_vm0, %v1231_v60, %v3349_v0  ;;  %v1259_v57 = vsel %vm47_vm0, %v1237_v9, %v3352_v58 }
 0x4a8   :  { %1374 = vrot.lane.b32.xlu1 %v1256_v24, %s1898_s13  ;;  %1380 = vrot.lane.b32.xlu0 %v1259_v57, %s1898_s13 }
 0x4aa   :  { %v1235_v38 = vpop.permute.xlu1 %1234  ;;  %v1241_v25 = vpop.permute.xlu0 %1240 }
 0x4ab   :  { %v1258_v28 = vsel %vm47_vm0, %v1235_v38, %v3367_v34  ;;  %v1261_v47 = vsel %vm47_vm0, %v1241_v25, %v3370_v8 }
 0x4ac   :  { %1378 = vrot.lane.b32.xlu1 %v1258_v28, %s1898_s13  ;;  %1384 = vrot.lane.b32.xlu0 %v1261_v47, %s1898_s13 }
 0x4ae   :  { %v1239_v61 = vpop.permute.xlu1 %1238  ;;  %v1245_v60 = vpop.permute.xlu0 %1244 }
 0x4af   :  { %v1260_v9 = vsel %vm47_vm0, %v1239_v61, %v3385_v22  ;;  %v1263_v24 = vsel %vm47_vm0, %v1245_v60, %v3388_v44  ;;  %v4153_v60 = vld [vmem:[#allocation46_spill] sm:$0xff] }
 0x4b0   :  { %1382 = vrot.lane.b32.xlu1 %v1260_v9, %s1898_s13  ;;  %1388 = vrot.lane.b32.xlu0 %v1263_v24, %s1898_s13  ;;  %v4154_v9 = vld [vmem:[#allocation45_spill] sm:$0xff] }
 0x4b2   :  { %v1243_v57 = vpop.permute.xlu1 %1242  ;;  %v1249_v38 = vpop.permute.xlu0 %1248 }
 0x4b3   :  { %v1262_v25 = vsel %vm47_vm0, %v1243_v57, %v3400_v18  ;;  %v1265_v28 = vsel %vm47_vm0, %v1249_v38, %v3403_v26 }
 0x4b4   :  { %1386 = vrot.lane.b32.xlu1 %v1262_v25, %s1898_s13  ;;  %1392 = vrot.lane.b32.xlu0 %v1265_v28, %s1898_s13 }
 0x4b6   :  { %v1247_v47 = vpop.permute.xlu1 %1246 }
 0x4b7   :  { %v1264_v61 = vsel %vm47_vm0, %v1247_v47, %v3411_v54 }
 0x4b8   :  { %1390 = vrot.lane.b32.xlu1 %v1264_v61, %s1898_s13  ;;  %1761 = vrot.lane.b32.xlu0 %v4153_v60, %s1896_s18 }
 0x4bc   :  { %1759 = vrot.lane.b32.xlu1 %v4154_v9, %s1896_s18 }
 0x4d6   :  { %v1653_v24 = vpop.permute.xlu0 %1652 }
 0x4d7   :  { %v1699_v22 = vsel %vm1169_vm3, %v3474_v50, %v1653_v24  ;;  %v4158_v24 = vld [vmem:[#allocation12_spill] sm:$0xff] }
 0x4d8   :  { %v1715_v35 = vmul.f32 %v1699_v22, %v3131_v11  ;;  %v1780_v22 = vsel %vm1730_vm4, %v4159_v41, %v4158_v24 }
 0x4da   :  { %v1651_v57 = vpop.permute.xlu1 %1650  ;;  %v1657_v30 = vpop.permute.xlu0 %1656  ;;  %v1796_v13 = vmul.f32 %v1780_v22, %v1715_v35 }
 0x4db   :  { %v1698_v8 = vsel %vm1169_vm3, %v3480_v36, %v1651_v57  ;;  %v1701_v34 = vsel %vm1169_vm3, %v3482_v5, %v1657_v30 }
 0x4dc   :  { %v1714_v36 = vmul.f32 %v1698_v8, %v3142_v52  ;;  %v1717_v57 = vmul.f32 %v1701_v34, %v3145_v59  ;;  %v4162_v8 = vld [vmem:[#allocation14_spill] sm:$0xff] }
 0x4de   :  { %v1655_v38 = vpop.permute.xlu1 %1654  ;;  %v1661_v26 = vpop.permute.xlu0 %1660 }
 0x4df   :  { %v1700_v30 = vsel %vm1169_vm3, %v3485_v6, %v1655_v38  ;;  %v1703_v5 = vsel %vm1169_vm3, %v3487_v53, %v1661_v26  ;;  %v4163_v26 = vld [vmem:[#allocation18_spill] sm:$0xff] }
 0x4e0   :  { %v1716_v24 = vmul.f32 %v1700_v30, %v3158_v27  ;;  %v4165_v30 = vld [vmem:[#allocation17_spill] sm:$0xff] }
 0x4e2   :  { %v1659_v25 = vpop.permute.xlu1 %1658  ;;  %v1665_v18 = vpop.permute.xlu0 %1664 }
 0x4e3   :  { %v1705_v22 = vsel %vm1169_vm3, %v3491_v43, %v1665_v18 }
 0x4e6   :  { %v1663_v28 = vpop.permute.xlu1 %1662  ;;  %v1669_v32 = vpop.permute.xlu0 %1668 }
 0x4ea   :  { %v3691_v44 = vpop.permute.xlu1 %1666  ;;  %v3693_v47 = vpop.permute.xlu0 %1672 }
 0x4ee   :  { %v3695_v61 = vpop.permute.xlu1 %1670  ;;  %v3697_v54 = vpop.permute.xlu0 %1676 }
 0x4f2   :  { %v3700_v60 = vpop.permute.xlu1 %1674  ;;  %v3702_v9 = vpop.permute.xlu0 %1680 }
 0x4f3   :  { %4155 = vst [vmem:[#allocation46_spill] sm:$0xff] %v3700_v60  ;;  %4156 = vst [vmem:[#allocation45_spill] sm:$0xff] %v3702_v9 }
 0x4f6   :  { %v3715_v40 = vpop.permute.xlu1 %1678 }
 0x4f7   :  { %4157 = vst [vmem:[#allocation60_spill] sm:$0xff] %v3715_v40  ;;  %v4161_v40 = vld [vmem:[#allocation16_spill] sm:$0xff] }
 0x50a   :  { %v1365_v60 = vpop.permute.xlu0 %1364 }
 0x50b   :  { %v1411_v9 = vsel %vm1169_vm3, %v3556_v33, %v1365_v60 }
 0x50c   :  { %v1427_v50 = vmul.f32 %v1411_v9, %v3131_v11  ;;  %v4160_v9 = vld [vmem:[#allocation51_spill] sm:$0xff] }
 0x50d   :  { %v1779_v41 = vsel %vm1730_vm4, %v4161_v40, %v4160_v9 }
 0x50e   :  { %v1443_v11 = vadd.f32 %v1427_v50, %v3281_v4  ;;  %v1363_v33 = vpop.permute.xlu1 %1362  ;;  %v1369_v60 = vpop.permute.xlu0 %1368  ;;  %v1782_v4 = vsel %vm1730_vm4, %v4163_v26, %v4162_v8  ;;  %v1795_v40 = vmul.f32 %v1779_v41, %v1714_v36 }
 0x50f   :  { %v1410_v35 = vsel %vm1169_vm3, %v3561_v23, %v1363_v33  ;;  %v1413_v34 = vsel %vm1169_vm3, %v3563_v51, %v1369_v60  ;;  %v1798_v50 = vmul.f32 %v1782_v4, %v1717_v57  ;;  %v1719_v23 = vmul.f32 %v1703_v5, %v3161_v63  ;;  %v4164_v57 = vld [vmem:[#allocation13_spill] sm:$0xff]  ;;  %v4167_v33 = vld [vmem:[#allocation20_spill] sm:$0xff]  ;;  %v4168_v4 = vld [vmem:[#allocation31_spill] sm:$0xff] }
 0x510   :  { %v1812_v6 = vadd.f32 %v1796_v13, %v1443_v11  ;;  %v1426_v53 = vmul.f32 %v1410_v35, %v3142_v52  ;;  %v1429_v38 = vmul.f32 %v1413_v34, %v3145_v59  ;;  %v1702_v51 = vsel %vm1169_vm3, %v3489_v19, %v1659_v25  ;;  %v4166_v11 = vld [vmem:[#allocation32_spill] sm:$0xff] }
 0x511   :  { %v1781_v5 = vsel %vm1730_vm4, %v4165_v30, %v4164_v57  ;;  %v1784_v19 = vsel %vm1730_vm4, %v4167_v33, %v4166_v11  ;;  %v1718_v35 = vmul.f32 %v1702_v51, %v3174_v37  ;;  %v1721_v34 = vmul.f32 %v1705_v22, %v3177_v55  ;;  %v4174_v57 = vld [vmem:[#allocation36_spill] sm:$0xff] }
 0x512   :  { %1829 = vst.msk [vmem:[#allocation2 + $0x8] sm:$0xff] %vm1827_vm5, %v1812_v6  ;;  %v1442_v52 = vadd.f32 %v1426_v53, %v3295_v42  ;;  %v1445_v59 = vadd.f32 %v1429_v38, %v3298_v12  ;;  %v1367_v13 = vpop.permute.xlu1 %1366  ;;  %v1373_v36 = vpop.permute.xlu0 %1372  ;;  %v1797_v9 = vmul.f32 %v1781_v5, %v1716_v24  ;;  %v1800_v41 = vmul.f32 %v1784_v19, %v1719_v23  ;;  %v4169_v6 = vld [vmem:[#allocation19_spill] sm:$0xff]  ;;  %v4172_v24 = vld [vmem:[#allocation34_spill] sm:$0xff]  ;;  %v4175_v30 = vld [vmem:[#allocation24_spill] sm:$0xff] }
 0x513   :  { %v1412_v18 = vsel %vm1169_vm3, %v3565_v17, %v1367_v13  ;;  %v1415_v42 = vsel %vm1169_vm3, %v3567_v20, %v1373_v36  ;;  %v1704_v17 = vsel %vm1169_vm3, %v3493_v39, %v1663_v28  ;;  %v1707_v20 = vsel %vm1169_vm3, %v3495_v46, %v1669_v32  ;;  %v4170_v39 = vld [vmem:[#allocation33_spill] sm:$0xff]  ;;  %v4173_v23 = vld [vmem:[#allocation22_spill] sm:$0xff] }
 0x514   :  { %v1811_v12 = vadd.f32 %v1795_v40, %v1442_v52  ;;  %v1814_v43 = vadd.f32 %v1798_v50, %v1445_v59  ;;  %v1428_v25 = vmul.f32 %v1412_v18, %v3158_v27  ;;  %v1431_v60 = vmul.f32 %v1415_v42, %v3161_v63  ;;  %v4171_v28 = vld [vmem:[#allocation21_spill] sm:$0xff] }
 0x515   :  { %v1783_v53 = vsel %vm1730_vm4, %v4169_v6, %v4168_v4  ;;  %v1785_v32 = vsel %vm1730_vm4, %v4171_v28, %v4170_v39  ;;  %v1786_v51 = vsel %vm1730_vm4, %v4173_v23, %v4172_v24  ;;  %v1720_v52 = vmul.f32 %v1704_v17, %v3190_v2  ;;  %v4185_v28 = vld [vmem:[#allocation5_spill] sm:$0xff]  ;;  %v4190_v24 = vld [vmem:[#allocation50_spill] sm:$0xff] }
 0x516   :  { %1828 = vst.msk [vmem:[#allocation2] sm:$0xff] %vm1827_vm5, %v1811_v12  ;;  %1831 = vst.msk [vmem:[#allocation2 + $0x18] sm:$0xff] %vm1827_vm5, %v1814_v43  ;;  %v1444_v27 = vadd.f32 %v1428_v25, %v3313_v15  ;;  %v1447_v63 = vadd.f32 %v1431_v60, %v3316_v49  ;;  %v1371_v8 = vpop.permute.xlu1 %1370  ;;  %v1377_v26 = vpop.permute.xlu0 %1376  ;;  %v1799_v22 = vmul.f32 %v1783_v53, %v1718_v35  ;;  %v4176_v43 = vld [vmem:[#allocation35_spill] sm:$0xff]  ;;  %v4180_v35 = vld [vmem:[#allocation41_spill] sm:$0xff] }
 0x517   :  { %v1414_v46 = vsel %vm1169_vm3, %v3569_v29, %v1371_v8  ;;  %v1417_v15 = vsel %vm1169_vm3, %v3571_v31, %v1377_v26  ;;  %v1723_v29 = vmul.f32 %v1707_v20, %v3193_v21  ;;  %v1802_v59 = vmul.f32 %v1786_v51, %v1721_v34  ;;  %v4177_v25 = vld [vmem:[#allocation23_spill] sm:$0xff]  ;;  %v4183_v26 = vld [vmem:[#allocation42_spill] sm:$0xff] }
 0x518   :  { %v1813_v49 = vadd.f32 %v1797_v9, %v1444_v27  ;;  %v1816_v38 = vadd.f32 %v1800_v41, %v1447_v63  ;;  %v1430_v40 = vmul.f32 %v1414_v46, %v3174_v37  ;;  %v1433_v50 = vmul.f32 %v1417_v15, %v3177_v55  ;;  %v4178_v9 = vld [vmem:[#allocation9_spill] sm:$0xff]  ;;  %v4181_v27 = vld [vmem:[#allocation38_spill] sm:$0xff]  ;;  %v4184_v53 = vld [vmem:[#allocation43_spill] sm:$0xff] }
 0x519   :  { %v1706_v31 = vsel %vm1169_vm3, %v3497_v62, %v3691_v44  ;;  %v1788_v5 = vsel %vm1730_vm4, %v4175_v30, %v4174_v57  ;;  %v1709_v44 = vsel %vm1169_vm3, %v3499_v14, %v3693_v47  ;;  %v1801_v18 = vmul.f32 %v1785_v32, %v1720_v52  ;;  %v4182_v63 = vld [vmem:[#allocation26_spill] sm:$0xff]  ;;  %v4191_v51 = vld [vmem:[#allocation55_spill] sm:$0xff]  ;;  %v4192_v52 = vld [vmem:[#allocation56_spill] sm:$0xff] }
 0x51a   :  { %1830 = vst.msk [vmem:[#allocation2 + $0x10] sm:$0xff] %vm1827_vm5, %v1813_v49  ;;  %1833 = vst.msk [vmem:[#allocation2 + $0x28] sm:$0xff] %vm1827_vm5, %v1816_v38  ;;  %v1446_v37 = vadd.f32 %v1430_v40, %v3331_v1  ;;  %v1449_v55 = vadd.f32 %v1433_v50, %v3334_v56  ;;  %v1375_v13 = vpop.permute.xlu1 %1374  ;;  %v1381_v36 = vpop.permute.xlu0 %1380  ;;  %v1804_v42 = vmul.f32 %v1788_v5, %v1723_v29  ;;  %v4187_v49 = vld [vmem:[#allocation37_spill] sm:$0xff]  ;;  %v4189_v50 = vld [vmem:[#allocation46_spill] sm:$0xff] }
 0x51b   :  { %v1416_v62 = vsel %vm1169_vm3, %v3573_v48, %v1375_v13  ;;  %v1419_v1 = vsel %vm1169_vm3, %v3575_v45, %v1381_v36  ;;  %v1722_v12 = vmul.f32 %v1706_v31, %v3206_v16  ;;  %v1725_v14 = vmul.f32 %v1709_v44, %v4141_v3  ;;  %v4188_v38 = vld [vmem:[#allocation25_spill] sm:$0xff]  ;;  %v4193_v13 = vld [vmem:[#allocation39_spill] sm:$0xff]  ;;  %v4194_v36 = vld [vmem:[#allocation28_spill] sm:$0xff] }
 0x51c   :  { %v1815_v56 = vadd.f32 %v1799_v22, %v1446_v37  ;;  %v1818_v11 = vadd.f32 %v1802_v59, %v1449_v55  ;;  %v1432_v33 = vmul.f32 %v1416_v62, %v3190_v2  ;;  %v1435_v19 = vmul.f32 %v1419_v1, %v3193_v21  ;;  %v4195_v44 = vld [vmem:[#allocation44_spill] sm:$0xff]  ;;  %v4196_v1 = vld [vmem:[#allocation49_spill] sm:$0xff] }
 0x51d   :  { %v1708_v48 = vsel %vm1169_vm3, %v3501_v7, %v3695_v61  ;;  %v1787_v60 = vsel %vm1730_vm4, %v4177_v25, %v4176_v43  ;;  %v1711_v7 = vsel %vm1169_vm3, %v4178_v9, %v3697_v54  ;;  %v4179_v61 = vld [vmem:[#allocation11_spill] sm:$0xff]  ;;  %v1790_v8 = vsel %vm1730_vm4, %v4182_v63, %v4181_v27  ;;  %v4206_v27 = vld [vmem:[#allocation60_spill] sm:$0xff]  ;;  %v4207_v63 = vld [vmem:[#allocation10_spill] sm:$0xff] }
 0x51e   :  { %1832 = vst.msk [vmem:[#allocation2 + $0x20] sm:$0xff] %vm1827_vm5, %v1815_v56  ;;  %1835 = vst.msk [vmem:[#allocation2 + $0x38] sm:$0xff] %vm1827_vm5, %v1818_v11  ;;  %v1448_v45 = vadd.f32 %v1432_v33, %v3349_v0  ;;  %v1451_v2 = vadd.f32 %v1435_v19, %v3352_v58  ;;  %v1379_v21 = vpop.permute.xlu1 %1378  ;;  %v1385_v47 = vpop.permute.xlu0 %1384  ;;  %v1803_v54 = vmul.f32 %v1787_v60, %v1722_v12  ;;  %v4197_v11 = vld [vmem:[#allocation6_spill] sm:$0xff]  ;;  %v4199_v12 = vld [vmem:[#allocation52_spill] sm:$0xff] }
 0x51f   :  { %v1418_v41 = vsel %vm1169_vm3, %v4179_v61, %v1379_v21  ;;  %v1421_v0 = vsel %vm1169_vm3, %v4180_v35, %v1385_v47  ;;  %v1724_v4 = vmul.f32 %v1708_v48, %v4183_v26  ;;  %v1806_v6 = vmul.f32 %v1790_v8, %v1725_v14  ;;  %v4200_v48 = vld [vmem:[#allocation57_spill] sm:$0xff]  ;;  %v4204_v61 = vld [vmem:[#allocation27_spill] sm:$0xff] }
 0x520   :  { %v1817_v58 = vadd.f32 %v1801_v18, %v1448_v45  ;;  %v1820_v34 = vadd.f32 %v1804_v42, %v1451_v2  ;;  %v1434_v17 = vmul.f32 %v1418_v41, %v3206_v16  ;;  %v1437_v20 = vmul.f32 %v1421_v0, %v4141_v3  ;;  %v4186_v16 = vld [vmem:[#allocation47_spill] sm:$0xff]  ;;  %v4198_v42 = vld [vmem:[#allocation45_spill] sm:$0xff]  ;;  %v4201_v2 = vld [vmem:[#allocation58_spill] sm:$0xff] }
 0x521   :  { %v1727_v39 = vmul.f32 %v1711_v7, %v4184_v53  ;;  %v1789_v40 = vsel %vm1730_vm4, %v4188_v38, %v4187_v49  ;;  %v1710_v23 = vsel %vm1169_vm3, %v4190_v24, %v4189_v50  ;;  %v1792_v57 = vsel %vm1730_vm4, %v4194_v36, %v4193_v13  ;;  %v4202_v60 = vld [vmem:[#allocation53_spill] sm:$0xff]  ;;  %v4203_v7 = vld [vmem:[#allocation40_spill] sm:$0xff] }
 0x522   :  { %1834 = vst.msk [vmem:[#allocation2 + $0x30] sm:$0xff] %vm1827_vm5, %v1817_v58  ;;  %1837 = vst.msk [vmem:[#allocation2 + $0x48] sm:$0xff] %vm1827_vm5, %v1820_v34  ;;  %v1450_v32 = vadd.f32 %v1434_v17, %v4185_v28  ;;  %v1453_v46 = vadd.f32 %v1437_v20, %v4186_v16  ;;  %v1383_v3 = vpop.permute.xlu1 %1382  ;;  %v1389_v15 = vpop.permute.xlu0 %1388  ;;  %v1805_v30 = vmul.f32 %v1789_v40, %v1724_v4  ;;  %v4205_v58 = vld [vmem:[#allocation7_spill] sm:$0xff]  ;;  %v4209_v4 = vld [vmem:[#allocation30_spill] sm:$0xff] }
 0x523   :  { %v1420_v22 = vsel %vm1169_vm3, %v4191_v51, %v1383_v3  ;;  %v1423_v29 = vsel %vm1169_vm3, %v4192_v52, %v1389_v15  ;;  %v1808_v5 = vmul.f32 %v1792_v57, %v1727_v39  ;;  %v1726_v62 = vmul.f32 %v1710_v23, %v4195_v44  ;;  %v4210_v39 = vld [vmem:[#allocation48_spill] sm:$0xff]  ;;  %v4212_v38 = vld [vmem:[#allocation29_spill] sm:$0xff] }
 0x524   :  { %v1819_v59 = vadd.f32 %v1803_v54, %v1450_v32  ;;  %v1822_v31 = vadd.f32 %v1806_v6, %v1453_v46  ;;  %v1436_v37 = vmul.f32 %v1420_v22, %v4183_v26  ;;  %v1439_v55 = vmul.f32 %v1423_v29, %v4184_v53  ;;  %v4208_v54 = vld [vmem:[#allocation59_spill] sm:$0xff]  ;;  %v4211_v32 = vld [vmem:[#allocation54_spill] sm:$0xff]  ;;  %v4213_v50 = vld [vmem:[#allocation8_spill] sm:$0xff] }
 0x525   :  { %v1713_v14 = vsel %vm1169_vm3, %v4199_v12, %v4198_v42  ;;  %v1791_v41 = vsel %vm1730_vm4, %v4204_v61, %v4203_v7  ;;  %v1712_v8 = vsel %vm1169_vm3, %v4207_v63, %v4206_v27 }
 0x526   :  { %1836 = vst.msk [vmem:[#allocation2 + $0x40] sm:$0xff] %vm1827_vm5, %v1819_v59  ;;  %1839 = vst.msk [vmem:[#allocation2 + $0x58] sm:$0xff] %vm1827_vm5, %v1822_v31  ;;  %v1452_v56 = vadd.f32 %v1436_v37, %v4196_v1  ;;  %v1455_v33 = vadd.f32 %v1439_v55, %v4197_v11  ;;  %v1387_v19 = vpop.permute.xlu1 %1386  ;;  %v1393_v18 = vpop.permute.xlu0 %1392  ;;  %v1807_v35 = vmul.f32 %v1791_v41, %v1726_v62 }
 0x527   :  { %v1422_v45 = vsel %vm1169_vm3, %v4200_v48, %v1387_v19  ;;  %v1425_v21 = vsel %vm1169_vm3, %v4201_v2, %v1393_v18  ;;  %v1729_v0 = vmul.f32 %v1713_v14, %v4202_v60  ;;  %v1728_v3 = vmul.f32 %v1712_v8, %v4211_v32 }
 0x528   :  { %v1821_v47 = vadd.f32 %v1805_v30, %v1452_v56  ;;  %v1824_v43 = vadd.f32 %v1808_v5, %v1455_v33  ;;  %v1438_v25 = vmul.f32 %v1422_v45, %v4195_v44  ;;  %v1441_v9 = vmul.f32 %v1425_v21, %v4202_v60 }
 0x52a   :  { %1838 = vst.msk [vmem:[#allocation2 + $0x50] sm:$0xff] %vm1827_vm5, %v1821_v47  ;;  %1841 = vst.msk [vmem:[#allocation2 + $0x68] sm:$0xff] %vm1827_vm5, %v1824_v43  ;;  %v1454_v34 = vadd.f32 %v1438_v25, %v4205_v58  ;;  %v1391_v17 = vpop.permute.xlu1 %1390  ;;  %v1762_v20 = vpop.permute.xlu0 %1761  ;;  %v1457_v28 = vadd.f32 %v1441_v9, %v4210_v39 }
 0x52b   :  { %v1424_v26 = vsel %vm1169_vm3, %v4208_v54, %v1391_v17  ;;  %v1794_v6 = vsel %vm1730_vm4, %v4209_v4, %v1762_v20 }
 0x52c   :  { %v1823_v53 = vadd.f32 %v1807_v35, %v1454_v34  ;;  %v1440_v16 = vmul.f32 %v1424_v26, %v4211_v32  ;;  %v1810_v46 = vmul.f32 %v1794_v6, %v1729_v0 }
 0x52e   :  { %1840 = vst.msk [vmem:[#allocation2 + $0x60] sm:$0xff] %vm1827_vm5, %v1823_v53  ;;  %v1826_v15 = vadd.f32 %v1810_v46, %v1457_v28  ;;  %v1760_v49 = vpop.permute.xlu1 %1759  ;;  %v1456_v24 = vadd.f32 %v1440_v16, %v4213_v50 }
 0x52f   :  { %v1793_v40 = vsel %vm1730_vm4, %v4212_v38, %v1760_v49 }
 0x530   :  { %1843 = vst.msk [vmem:[#allocation2 + $0x78] sm:$0xff] %vm1827_vm5, %v1826_v15  ;;  %v1809_v23 = vmul.f32 %v1793_v40, %v1728_v3 }
 0x532   :  { %v1825_v51 = vadd.f32 %v1809_v23, %v1456_v24 }
 0x534   :  { %1842 = vst.msk [vmem:[#allocation2 + $0x70] sm:$0xff] %vm1827_vm5, %v1825_v51 }
 0x535   :  { %1882 = shalt.err (!%p1879_p4)
}
 0x536   :  { %s1900_s23 = smov 128   ;;  %s1901_s24 = smov 8  }
 0x537   :  { %1855 = dma.vmem_to_hbm [thread:$0]  %s1850_s21, 2048, %s3941_s2, [#allocation3], %s1900_s23, %s1900_s23, %s1901_s24  }
 0x538   :  { %1891 = dma.done.wait [#allocation3], 2048  }
 0x539   :  { %1892 = vsyncadd [#allocation3], 4294965248 }
 0x53a   :  { %1859 = vsyncpa [#allocation3], 1 }

</bundles_post_ra>
